<compile_context>
chip_gen: v5e
topology: v5e:2x2
jax: 0.10.0
libtpu: 0.0.40
codegen_flags: <defaults>
</compile_context>

<pallas_src>
import functools

import jax
import jax.numpy as jnp
from jax.experimental import pallas as pl
from jax.experimental.pallas import tpu as pltpu

EPS = 1e-3  # nflows' epsilon in sigmoid(x + 2) + eps scale activation


# ----------------------------- Pallas kernel -------------------------------
def flow_kernel(x_ref,
                ar_w1_ref, ar_b1_ref, ar_ws_ref, ar_bs_ref, ar_wm_ref, ar_bm_ref,
                cp_w1_ref, cp_b1_ref, cp_ws_ref, cp_bs_ref, cp_wm_ref, cp_bm_ref,
                z_ref, ld_ref, *, num_layers, d_id):
    """One (D, TILE_N) batch tile; batch on the lane axis, features on sublanes."""
    D, TN = x_ref.shape
    # identity-feature mask for the coupling transform, built & broadcast once
    id_mask = jnp.broadcast_to(
        jax.lax.broadcasted_iota(jnp.int32, (D, 1), 0) < d_id, (D, TN))

    z = x_ref[...].astype(jnp.float32)
    # Running product of every per-feature scale; a single log + sublane-sum at
    # the end replaces 2*num_layers per-transform log/sum passes.  Safe because
    # scale >= EPS and D / num_layers are tiny, so the product stays well
    # inside the f32 range (>= ~1e-12 here).
    sprod = jnp.ones((D, TN), jnp.float32)

    for l in range(num_layers):          # unrolled: num_layers is small & static
        # ---- MaskedAffineAutoregressiveTransform (1-hidden-layer MADE) ------
        zb = z.astype(jnp.bfloat16)
        h = jax.nn.relu(
            jnp.dot(ar_w1_ref[l], zb, preferred_element_type=jnp.float32)
            + ar_b1_ref[l])
        hb = h.astype(jnp.bfloat16)
        shift = (jnp.dot(ar_ws_ref[l], hb, preferred_element_type=jnp.float32)
                 + ar_bs_ref[l])
        # nflows' "+2.0" is folded into ar_bm at param-prep time.
        scale = jax.nn.sigmoid(
            jnp.dot(ar_wm_ref[l], hb, preferred_element_type=jnp.float32)
            + ar_bm_ref[l]) + EPS
        z = scale * z + shift
        sprod = sprod * scale

        # ---- AffineCouplingTransform (first d_id features are identity) -----
        zb = z.astype(jnp.bfloat16)
        hc = jax.nn.relu(
            jnp.dot(cp_w1_ref[l], zb, preferred_element_type=jnp.float32)
            + cp_b1_ref[l])
        hcb = hc.astype(jnp.bfloat16)
        # cp_ws / cp_bs rows for identity features are pre-zeroed at prep time,
        # so c_shift is exactly 0 there without a select.
        c_shift = (jnp.dot(cp_ws_ref[l], hcb, preferred_element_type=jnp.float32)
                   + cp_bs_ref[l])
        c_scale = jnp.where(
            id_mask, 1.0,
            jax.nn.sigmoid(
                jnp.dot(cp_wm_ref[l], hcb, preferred_element_type=jnp.float32)
                + cp_bm_ref[l]) + EPS)
        z = c_scale * z + c_shift
        sprod = sprod * c_scale

    z_ref[...] = z
    ld_ref[...] = jnp.sum(jnp.log(sprod), axis=0, keepdims=True)


# ------------------------------- wrappers -----------------------------------
def _resident_spec(shape):
    """Whole-array block with a constant index_map (stays resident in VMEM)."""
    nd = len(shape)
    return pl.BlockSpec(shape, lambda i, _nd=nd: (0,) * _nd)


def _prep_kernel_params(params, d_id):
    """Transpose weights to the batch-on-lanes layout, fold the +2.0 into the
    scale biases, pre-zero the coupling shift for identity features, and cast
    matmul operands (weights only) to bf16."""
    (ar_w1, ar_b1, ar_ws, ar_bs, ar_wm, ar_bm,
     cp_w1, cp_b1, cp_ws, cp_bs, cp_wm, cp_bm) = params
    D = ar_w1.shape[1]
    keep = (jnp.arange(D) >= d_id).astype(jnp.float32)   # transformed features

    def t(w):  # (L, A, B) -> (L, B, A)
        return jnp.transpose(w, (0, 2, 1))

    return (
        t(ar_w1).astype(jnp.bfloat16), t(ar_b1),
        t(ar_ws).astype(jnp.bfloat16), t(ar_bs),
        t(ar_wm).astype(jnp.bfloat16), t(ar_bm + 2.0),
        t(cp_w1).astype(jnp.bfloat16), t(cp_b1),
        t(cp_ws * keep[None, None, :]).astype(jnp.bfloat16),
        t(cp_bs * keep[None, None, :]),
        t(cp_wm).astype(jnp.bfloat16), t(cp_bm + 2.0),
    )


@functools.partial(jax.jit, static_argnames=("num_layers", "d_id", "tile_n"))
def flow_forward(x, params, *, num_layers, d_id, tile_n=512):
    N, D = x.shape
    L = num_layers

    # Lane-dense layout: batch on the lane (last) axis; pad N to a multiple of
    # the tile (padded rows compute garbage that is sliced off afterwards).
    tn = min(tile_n, 128 * pl.cdiv(N, 128))
    Np = tn * pl.cdiv(N, tn)
    x_t = jnp.zeros((D, Np), jnp.float32).at[:, :N].set(
        x.T.astype(jnp.float32))

    kparams = _prep_kernel_params(params, d_id)
    H = kparams[0].shape[1]                 # transposed ar_w1 is (L, H, D)

    flops = 12 * L * D * H * Np             # 6 matmuls/layer, 2*D*H*Np each
    transcendentals = (2 * L + 1) * D * Np  # sigmoids + final logs
    bytes_accessed = (2 * D * Np + Np) * 4 + sum(
        int(p.size) * p.dtype.itemsize for p in kparams)

    kernel = functools.partial(flow_kernel, num_layers=L, d_id=d_id)
    z_t, ld = pl.pallas_call(
        kernel,
        grid=(Np // tn,),
        in_specs=[pl.BlockSpec((D, tn), lambda i: (0, i))]
                 + [_resident_spec(p.shape) for p in kparams],
        out_specs=(pl.BlockSpec((D, tn), lambda i: (0, i)),
                   pl.BlockSpec((1, tn), lambda i: (0, i))),
        out_shape=(jax.ShapeDtypeStruct((D, Np), jnp.float32),
                   jax.ShapeDtypeStruct((1, Np), jnp.float32)),
        compiler_params=pltpu.CompilerParams(
            dimension_semantics=("parallel",)),  # megacore on v7x
        cost_estimate=pl.CostEstimate(flops=flops,
                                      transcendentals=transcendentals,
                                      bytes_accessed=bytes_accessed),
    )(x_t, *kparams)
    return z_t[:, :N].T, ld[0, :N]


# ------------------------- parameter initialization ------------------------
def init_params(key, D, H, L):
    d_id = D // 2
    ks = jax.random.split(key, 12)

    def rnd(k, shape, s):
        return jax.random.normal(k, shape, jnp.float32) * s

    # MADE autoregressive masks (degrees 1..D, cyclic hidden degrees)
    in_deg = jnp.arange(1, D + 1)                       # (D,)
    hid_deg = (jnp.arange(H) % (D - 1)) + 1             # (H,)
    m_in = (hid_deg[None, :] >= in_deg[:, None]).astype(jnp.float32)   # (D, H)
    m_out = (in_deg[None, :] > hid_deg[:, None]).astype(jnp.float32)   # (H, D)
    # coupling conditioner only sees identity features
    id_rows = (jnp.arange(D) < d_id).astype(jnp.float32)[:, None]      # (D, 1)

    ar_w1 = rnd(ks[0], (L, D, H), 0.3) * m_in[None]
    ar_b1 = rnd(ks[1], (L, 1, H), 0.1)
    ar_ws = rnd(ks[2], (L, H, D), 0.3) * m_out[None]
    ar_bs = rnd(ks[3], (L, 1, D), 0.1)
    ar_wm = rnd(ks[4], (L, H, D), 0.3) * m_out[None]
    ar_bm = rnd(ks[5], (L, 1, D), 0.1)

    cp_w1 = rnd(ks[6], (L, D, H), 0.3) * id_rows[None]
    cp_b1 = rnd(ks[7], (L, 1, H), 0.1)
    cp_ws = rnd(ks[8], (L, H, D), 0.3)
    cp_bs = rnd(ks[9], (L, 1, D), 0.1)
    cp_wm = rnd(ks[10], (L, H, D), 0.3)
    cp_bm = rnd(ks[11], (L, 1, D), 0.1)

    return (ar_w1, ar_b1, ar_ws, ar_bs, ar_wm, ar_bm,
            cp_w1, cp_b1, cp_ws, cp_bs, cp_wm, cp_bm), d_id


# ---------------------------- pure-JAX reference ----------------------------
def flow_ref(x, params, L, d_id, dot_dtype=None):
    """Natural-layout reference.  dot_dtype=jnp.bfloat16 mirrors the kernel's
    bf16 matmul operands (f32 accumulation); dot_dtype=None is full f32."""
    (ar_w1, ar_b1, ar_ws, ar_bs, ar_wm, ar_bm,
     cp_w1, cp_b1, cp_ws, cp_bs, cp_wm, cp_bm) = params
    D = x.shape[1]
    id_mask = (jnp.arange(D) < d_id)[None, :]

    def mm(a, b):
        if dot_dtype is not None:
            a = a.astype(dot_dtype)
            b = b.astype(dot_dtype)
        return jnp.dot(a, b, preferred_element_type=jnp.float32)

    z = x.astype(jnp.float32)
    ld = jnp.zeros((x.shape[0],), jnp.float32)
    for l in range(L):
        h = jax.nn.relu(mm(z, ar_w1[l]) + ar_b1[l])
        shift = mm(h, ar_ws[l]) + ar_bs[l]
        scale = jax.nn.sigmoid(mm(h, ar_wm[l]) + ar_bm[l] + 2.0) + EPS
        z = scale * z + shift
        ld = ld + jnp.sum(jnp.log(scale), axis=-1)

        hc = jax.nn.relu(mm(z, cp_w1[l]) + cp_b1[l])
        c_shift = jnp.where(id_mask, 0.0, mm(hc, cp_ws[l]) + cp_bs[l])
        c_scale = jnp.where(id_mask, 1.0,
                            jax.nn.sigmoid(mm(hc, cp_wm[l]) + cp_bm[l] + 2.0) + EPS)
        z = c_scale * z + c_shift
        ld = ld + jnp.sum(jnp.log(c_scale), axis=-1)
    return z, ld


# ----------------------------------- main -----------------------------------
if __name__ == "__main__":
    # batch ~ SineDataset size, input_size=4, hidden_size=32, num_layers=2
    N, D, H, L = 1000, 4, 32, 2
    key = jax.random.PRNGKey(0)
    k_x, k_p = jax.random.split(key)
    x = jax.random.normal(k_x, (N, D), jnp.float32)

    params, d_id = init_params(k_p, D, H, L)

    z, log_det = flow_forward(x, params, num_layers=L, d_id=d_id)
    jax.block_until_ready((z, log_det))
    assert z.shape == (N, D) and log_det.shape == (N,)

    # Tight check vs. a reference that uses the same bf16 matmul operands.
    z_bf, ld_bf = flow_ref(x, params, L, d_id, dot_dtype=jnp.bfloat16)
    assert jnp.allclose(z, z_bf, rtol=1e-4, atol=1e-4)
    assert jnp.allclose(log_det, ld_bf, rtol=1e-4, atol=1e-4)

    # Loose sanity check vs. full-f32 module semantics (bf16 matmul rounding).
    z_f32, ld_f32 = flow_ref(x, params, L, d_id, dot_dtype=None)
    assert jnp.allclose(z, z_f32, rtol=0.1, atol=0.1)
    assert jnp.allclose(log_det, ld_f32, rtol=0.1, atol=0.1)

    print("KERNEL_OK")
</pallas_src>

<mosaic_0001>
module attributes {stable_mosaic.version = 11 : i64} {
  func.func @flow_kernel(%arg0: i32, %arg1: memref<4x512xf32, #tpu.memory_space<vmem>>, %arg2: memref<2x32x4xbf16, #tpu.memory_space<vmem>>, %arg3: memref<2x32x1xf32, #tpu.memory_space<vmem>>, %arg4: memref<2x4x32xbf16, #tpu.memory_space<vmem>>, %arg5: memref<2x4x1xf32, #tpu.memory_space<vmem>>, %arg6: memref<2x4x32xbf16, #tpu.memory_space<vmem>>, %arg7: memref<2x4x1xf32, #tpu.memory_space<vmem>>, %arg8: memref<2x32x4xbf16, #tpu.memory_space<vmem>>, %arg9: memref<2x32x1xf32, #tpu.memory_space<vmem>>, %arg10: memref<2x4x32xbf16, #tpu.memory_space<vmem>>, %arg11: memref<2x4x1xf32, #tpu.memory_space<vmem>>, %arg12: memref<2x4x32xbf16, #tpu.memory_space<vmem>>, %arg13: memref<2x4x1xf32, #tpu.memory_space<vmem>>, %arg14: memref<4x512xf32, #tpu.memory_space<vmem>>, %arg15: memref<1x512xf32, #tpu.memory_space<vmem>>) attributes {dimension_semantics = [#tpu.dimension_semantics<parallel>], iteration_bounds = array<i64: 2>, scalar_prefetch = 0 : i64, scratch_operands = 0 : i64, tpu.core_type = #tpu.core_type<tc>, window_params = [{transform_indices = @transform_0, window_bounds = array<i64: 4, 512>}, {pipeline_mode = #tpu.pipeline_mode<synchronous>, transform_indices = @transform_1, window_bounds = array<i64: 2, 32, 4>}, {pipeline_mode = #tpu.pipeline_mode<synchronous>, transform_indices = @transform_2, window_bounds = array<i64: 2, 32, 1>}, {pipeline_mode = #tpu.pipeline_mode<synchronous>, transform_indices = @transform_3, window_bounds = array<i64: 2, 4, 32>}, {pipeline_mode = #tpu.pipeline_mode<synchronous>, transform_indices = @transform_4, window_bounds = array<i64: 2, 4, 1>}, {pipeline_mode = #tpu.pipeline_mode<synchronous>, transform_indices = @transform_5, window_bounds = array<i64: 2, 4, 32>}, {pipeline_mode = #tpu.pipeline_mode<synchronous>, transform_indices = @transform_6, window_bounds = array<i64: 2, 4, 1>}, {pipeline_mode = #tpu.pipeline_mode<synchronous>, transform_indices = @transform_7, window_bounds = array<i64: 2, 32, 4>}, {pipeline_mode = #tpu.pipeline_mode<synchronous>, transform_indices = @transform_8, window_bounds = array<i64: 2, 32, 1>}, {pipeline_mode = #tpu.pipeline_mode<synchronous>, transform_indices = @transform_9, window_bounds = array<i64: 2, 4, 32>}, {pipeline_mode = #tpu.pipeline_mode<synchronous>, transform_indices = @transform_10, window_bounds = array<i64: 2, 4, 1>}, {pipeline_mode = #tpu.pipeline_mode<synchronous>, transform_indices = @transform_11, window_bounds = array<i64: 2, 4, 32>}, {pipeline_mode = #tpu.pipeline_mode<synchronous>, transform_indices = @transform_12, window_bounds = array<i64: 2, 4, 1>}, {transform_indices = @transform_13, window_bounds = array<i64: 4, 512>}, {transform_indices = @transform_14, window_bounds = array<i64: 1, 512>}]} {
    %0 = tpu.iota {dimensions = array<i32: 0>} : vector<4x1xi32>
    %c2_i32 = arith.constant 2 : i32
    %1 = vector.broadcast %c2_i32 : i32 to vector<4x1xi32>
    %2 = arith.cmpi slt, %0, %1 : vector<4x1xi32>
    %3 = vector.shape_cast %2 : vector<4x1xi1> to vector<4x1xi1>
    %4 = vector.broadcast %3 : vector<4x1xi1> to vector<4x512xi1>
    %c0 = arith.constant 0 : index
    %c0_0 = arith.constant 0 : index
    %5 = vector.load %arg1[%c0, %c0_0] : memref<4x512xf32, #tpu.memory_space<vmem>>, vector<4x512xf32>
    %cst = arith.constant 1.000000e+00 : f32
    %6 = vector.broadcast %cst : f32 to vector<4x512xf32>
    %7 = arith.truncf %5 : vector<4x512xf32> to vector<4x512xbf16>
    %c0_1 = arith.constant 0 : index
    %c0_2 = arith.constant 0 : index
    %c0_3 = arith.constant 0 : index
    %8 = vector.load %arg2[%c0_1, %c0_2, %c0_3] : memref<2x32x4xbf16, #tpu.memory_space<vmem>>, vector<1x32x4xbf16>
    %9 = vector.shape_cast %8 : vector<1x32x4xbf16> to vector<32x4xbf16>
    %cst_4 = arith.constant dense<0.000000e+00> : vector<32x512xf32>
    %10 = tpu.matmul %9, %7, %cst_4 {dimension_numbers = #tpu.dot_dimension_numbers<[1], [0], [0], [1], [0, 0, 1, 1], [], []>} : vector<32x4xbf16>, vector<4x512xbf16>, vector<32x512xf32> -> vector<32x512xf32>
    %c0_5 = arith.constant 0 : index
    %c0_6 = arith.constant 0 : index
    %c0_7 = arith.constant 0 : index
    %11 = vector.load %arg3[%c0_5, %c0_6, %c0_7] : memref<2x32x1xf32, #tpu.memory_space<vmem>>, vector<1x32x1xf32>
    %12 = vector.shape_cast %11 : vector<1x32x1xf32> to vector<32x1xf32>
    %13 = vector.broadcast %12 : vector<32x1xf32> to vector<32x512xf32>
    %14 = arith.addf %10, %13 : vector<32x512xf32>
    %cst_8 = arith.constant 0.000000e+00 : f32
    %15 = vector.broadcast %cst_8 : f32 to vector<32x512xf32>
    %16 = arith.maximumf %14, %15 : vector<32x512xf32>
    %17 = arith.truncf %16 : vector<32x512xf32> to vector<32x512xbf16>
    %c0_9 = arith.constant 0 : index
    %c0_10 = arith.constant 0 : index
    %c0_11 = arith.constant 0 : index
    %18 = vector.load %arg4[%c0_9, %c0_10, %c0_11] : memref<2x4x32xbf16, #tpu.memory_space<vmem>>, vector<1x4x32xbf16>
    %19 = vector.shape_cast %18 : vector<1x4x32xbf16> to vector<4x32xbf16>
    %cst_12 = arith.constant dense<0.000000e+00> : vector<4x512xf32>
    %20 = tpu.matmul %19, %17, %cst_12 {dimension_numbers = #tpu.dot_dimension_numbers<[1], [0], [0], [1], [0, 0, 1, 1], [], []>} : vector<4x32xbf16>, vector<32x512xbf16>, vector<4x512xf32> -> vector<4x512xf32>
    %c0_13 = arith.constant 0 : index
    %c0_14 = arith.constant 0 : index
    %c0_15 = arith.constant 0 : index
    %21 = vector.load %arg5[%c0_13, %c0_14, %c0_15] : memref<2x4x1xf32, #tpu.memory_space<vmem>>, vector<1x4x1xf32>
    %22 = vector.shape_cast %21 : vector<1x4x1xf32> to vector<4x1xf32>
    %23 = vector.broadcast %22 : vector<4x1xf32> to vector<4x512xf32>
    %24 = arith.addf %20, %23 : vector<4x512xf32>
    %c0_16 = arith.constant 0 : index
    %c0_17 = arith.constant 0 : index
    %c0_18 = arith.constant 0 : index
    %25 = vector.load %arg6[%c0_16, %c0_17, %c0_18] : memref<2x4x32xbf16, #tpu.memory_space<vmem>>, vector<1x4x32xbf16>
    %26 = vector.shape_cast %25 : vector<1x4x32xbf16> to vector<4x32xbf16>
    %cst_19 = arith.constant dense<0.000000e+00> : vector<4x512xf32>
    %27 = tpu.matmul %26, %17, %cst_19 {dimension_numbers = #tpu.dot_dimension_numbers<[1], [0], [0], [1], [0, 0, 1, 1], [], []>} : vector<4x32xbf16>, vector<32x512xbf16>, vector<4x512xf32> -> vector<4x512xf32>
    %c0_20 = arith.constant 0 : index
    %c0_21 = arith.constant 0 : index
    %c0_22 = arith.constant 0 : index
    %28 = vector.load %arg7[%c0_20, %c0_21, %c0_22] : memref<2x4x1xf32, #tpu.memory_space<vmem>>, vector<1x4x1xf32>
    %29 = vector.shape_cast %28 : vector<1x4x1xf32> to vector<4x1xf32>
    %30 = vector.broadcast %29 : vector<4x1xf32> to vector<4x512xf32>
    %31 = arith.addf %27, %30 : vector<4x512xf32>
    %32 = arith.negf %31 : vector<4x512xf32>
    %33 = math.exp %32 : vector<4x512xf32>
    %cst_23 = arith.constant 1.000000e+00 : f32
    %34 = vector.broadcast %cst_23 : f32 to vector<4x512xf32>
    %35 = arith.addf %34, %33 : vector<4x512xf32>
    %36 = arith.divf %34, %35 : vector<4x512xf32>
    %cst_24 = arith.constant 1.000000e-03 : f32
    %37 = vector.broadcast %cst_24 : f32 to vector<4x512xf32>
    %38 = arith.addf %36, %37 : vector<4x512xf32>
    %39 = arith.mulf %38, %5 : vector<4x512xf32>
    %40 = arith.addf %39, %24 : vector<4x512xf32>
    %41 = arith.mulf %6, %38 : vector<4x512xf32>
    %42 = arith.truncf %40 : vector<4x512xf32> to vector<4x512xbf16>
    %c0_25 = arith.constant 0 : index
    %c0_26 = arith.constant 0 : index
    %c0_27 = arith.constant 0 : index
    %43 = vector.load %arg8[%c0_25, %c0_26, %c0_27] : memref<2x32x4xbf16, #tpu.memory_space<vmem>>, vector<1x32x4xbf16>
    %44 = vector.shape_cast %43 : vector<1x32x4xbf16> to vector<32x4xbf16>
    %cst_28 = arith.constant dense<0.000000e+00> : vector<32x512xf32>
    %45 = tpu.matmul %44, %42, %cst_28 {dimension_numbers = #tpu.dot_dimension_numbers<[1], [0], [0], [1], [0, 0, 1, 1], [], []>} : vector<32x4xbf16>, vector<4x512xbf16>, vector<32x512xf32> -> vector<32x512xf32>
    %c0_29 = arith.constant 0 : index
    %c0_30 = arith.constant 0 : index
    %c0_31 = arith.constant 0 : index
    %46 = vector.load %arg9[%c0_29, %c0_30, %c0_31] : memref<2x32x1xf32, #tpu.memory_space<vmem>>, vector<1x32x1xf32>
    %47 = vector.shape_cast %46 : vector<1x32x1xf32> to vector<32x1xf32>
    %48 = vector.broadcast %47 : vector<32x1xf32> to vector<32x512xf32>
    %49 = arith.addf %45, %48 : vector<32x512xf32>
    %cst_32 = arith.constant 0.000000e+00 : f32
    %50 = vector.broadcast %cst_32 : f32 to vector<32x512xf32>
    %51 = arith.maximumf %49, %50 : vector<32x512xf32>
    %52 = arith.truncf %51 : vector<32x512xf32> to vector<32x512xbf16>
    %c0_33 = arith.constant 0 : index
    %c0_34 = arith.constant 0 : index
    %c0_35 = arith.constant 0 : index
    %53 = vector.load %arg10[%c0_33, %c0_34, %c0_35] : memref<2x4x32xbf16, #tpu.memory_space<vmem>>, vector<1x4x32xbf16>
    %54 = vector.shape_cast %53 : vector<1x4x32xbf16> to vector<4x32xbf16>
    %cst_36 = arith.constant dense<0.000000e+00> : vector<4x512xf32>
    %55 = tpu.matmul %54, %52, %cst_36 {dimension_numbers = #tpu.dot_dimension_numbers<[1], [0], [0], [1], [0, 0, 1, 1], [], []>} : vector<4x32xbf16>, vector<32x512xbf16>, vector<4x512xf32> -> vector<4x512xf32>
    %c0_37 = arith.constant 0 : index
    %c0_38 = arith.constant 0 : index
    %c0_39 = arith.constant 0 : index
    %56 = vector.load %arg11[%c0_37, %c0_38, %c0_39] : memref<2x4x1xf32, #tpu.memory_space<vmem>>, vector<1x4x1xf32>
    %57 = vector.shape_cast %56 : vector<1x4x1xf32> to vector<4x1xf32>
    %58 = vector.broadcast %57 : vector<4x1xf32> to vector<4x512xf32>
    %59 = arith.addf %55, %58 : vector<4x512xf32>
    %c0_40 = arith.constant 0 : index
    %c0_41 = arith.constant 0 : index
    %c0_42 = arith.constant 0 : index
    %60 = vector.load %arg12[%c0_40, %c0_41, %c0_42] : memref<2x4x32xbf16, #tpu.memory_space<vmem>>, vector<1x4x32xbf16>
    %61 = vector.shape_cast %60 : vector<1x4x32xbf16> to vector<4x32xbf16>
    %cst_43 = arith.constant dense<0.000000e+00> : vector<4x512xf32>
    %62 = tpu.matmul %61, %52, %cst_43 {dimension_numbers = #tpu.dot_dimension_numbers<[1], [0], [0], [1], [0, 0, 1, 1], [], []>} : vector<4x32xbf16>, vector<32x512xbf16>, vector<4x512xf32> -> vector<4x512xf32>
    %c0_44 = arith.constant 0 : index
    %c0_45 = arith.constant 0 : index
    %c0_46 = arith.constant 0 : index
    %63 = vector.load %arg13[%c0_44, %c0_45, %c0_46] : memref<2x4x1xf32, #tpu.memory_space<vmem>>, vector<1x4x1xf32>
    %64 = vector.shape_cast %63 : vector<1x4x1xf32> to vector<4x1xf32>
    %65 = vector.broadcast %64 : vector<4x1xf32> to vector<4x512xf32>
    %66 = arith.addf %62, %65 : vector<4x512xf32>
    %67 = arith.negf %66 : vector<4x512xf32>
    %68 = math.exp %67 : vector<4x512xf32>
    %cst_47 = arith.constant 1.000000e+00 : f32
    %69 = vector.broadcast %cst_47 : f32 to vector<4x512xf32>
    %70 = arith.addf %69, %68 : vector<4x512xf32>
    %71 = arith.divf %69, %70 : vector<4x512xf32>
    %cst_48 = arith.constant 1.000000e-03 : f32
    %72 = vector.broadcast %cst_48 : f32 to vector<4x512xf32>
    %73 = arith.addf %71, %72 : vector<4x512xf32>
    %cst_49 = arith.constant 1.000000e+00 : f32
    %74 = vector.broadcast %cst_49 : f32 to vector<4x512xf32>
    %75 = arith.select %4, %74, %73 : vector<4x512xi1>, vector<4x512xf32>
    %76 = arith.mulf %75, %40 : vector<4x512xf32>
    %77 = arith.addf %76, %59 : vector<4x512xf32>
    %78 = arith.mulf %41, %75 : vector<4x512xf32>
    %79 = arith.truncf %77 : vector<4x512xf32> to vector<4x512xbf16>
    %c1 = arith.constant 1 : index
    %c0_50 = arith.constant 0 : index
    %c0_51 = arith.constant 0 : index
    %80 = vector.load %arg2[%c1, %c0_50, %c0_51] : memref<2x32x4xbf16, #tpu.memory_space<vmem>>, vector<1x32x4xbf16>
    %81 = vector.shape_cast %80 : vector<1x32x4xbf16> to vector<32x4xbf16>
    %cst_52 = arith.constant dense<0.000000e+00> : vector<32x512xf32>
    %82 = tpu.matmul %81, %79, %cst_52 {dimension_numbers = #tpu.dot_dimension_numbers<[1], [0], [0], [1], [0, 0, 1, 1], [], []>} : vector<32x4xbf16>, vector<4x512xbf16>, vector<32x512xf32> -> vector<32x512xf32>
    %c1_53 = arith.constant 1 : index
    %c0_54 = arith.constant 0 : index
    %c0_55 = arith.constant 0 : index
    %83 = vector.load %arg3[%c1_53, %c0_54, %c0_55] : memref<2x32x1xf32, #tpu.memory_space<vmem>>, vector<1x32x1xf32>
    %84 = vector.shape_cast %83 : vector<1x32x1xf32> to vector<32x1xf32>
    %85 = vector.broadcast %84 : vector<32x1xf32> to vector<32x512xf32>
    %86 = arith.addf %82, %85 : vector<32x512xf32>
    %cst_56 = arith.constant 0.000000e+00 : f32
    %87 = vector.broadcast %cst_56 : f32 to vector<32x512xf32>
    %88 = arith.maximumf %86, %87 : vector<32x512xf32>
    %89 = arith.truncf %88 : vector<32x512xf32> to vector<32x512xbf16>
    %c1_57 = arith.constant 1 : index
    %c0_58 = arith.constant 0 : index
    %c0_59 = arith.constant 0 : index
    %90 = vector.load %arg4[%c1_57, %c0_58, %c0_59] : memref<2x4x32xbf16, #tpu.memory_space<vmem>>, vector<1x4x32xbf16>
    %91 = vector.shape_cast %90 : vector<1x4x32xbf16> to vector<4x32xbf16>
    %cst_60 = arith.constant dense<0.000000e+00> : vector<4x512xf32>
    %92 = tpu.matmul %91, %89, %cst_60 {dimension_numbers = #tpu.dot_dimension_numbers<[1], [0], [0], [1], [0, 0, 1, 1], [], []>} : vector<4x32xbf16>, vector<32x512xbf16>, vector<4x512xf32> -> vector<4x512xf32>
    %c1_61 = arith.constant 1 : index
    %c0_62 = arith.constant 0 : index
    %c0_63 = arith.constant 0 : index
    %93 = vector.load %arg5[%c1_61, %c0_62, %c0_63] : memref<2x4x1xf32, #tpu.memory_space<vmem>>, vector<1x4x1xf32>
    %94 = vector.shape_cast %93 : vector<1x4x1xf32> to vector<4x1xf32>
    %95 = vector.broadcast %94 : vector<4x1xf32> to vector<4x512xf32>
    %96 = arith.addf %92, %95 : vector<4x512xf32>
    %c1_64 = arith.constant 1 : index
    %c0_65 = arith.constant 0 : index
    %c0_66 = arith.constant 0 : index
    %97 = vector.load %arg6[%c1_64, %c0_65, %c0_66] : memref<2x4x32xbf16, #tpu.memory_space<vmem>>, vector<1x4x32xbf16>
    %98 = vector.shape_cast %97 : vector<1x4x32xbf16> to vector<4x32xbf16>
    %cst_67 = arith.constant dense<0.000000e+00> : vector<4x512xf32>
    %99 = tpu.matmul %98, %89, %cst_67 {dimension_numbers = #tpu.dot_dimension_numbers<[1], [0], [0], [1], [0, 0, 1, 1], [], []>} : vector<4x32xbf16>, vector<32x512xbf16>, vector<4x512xf32> -> vector<4x512xf32>
    %c1_68 = arith.constant 1 : index
    %c0_69 = arith.constant 0 : index
    %c0_70 = arith.constant 0 : index
    %100 = vector.load %arg7[%c1_68, %c0_69, %c0_70] : memref<2x4x1xf32, #tpu.memory_space<vmem>>, vector<1x4x1xf32>
    %101 = vector.shape_cast %100 : vector<1x4x1xf32> to vector<4x1xf32>
    %102 = vector.broadcast %101 : vector<4x1xf32> to vector<4x512xf32>
    %103 = arith.addf %99, %102 : vector<4x512xf32>
    %104 = arith.negf %103 : vector<4x512xf32>
    %105 = math.exp %104 : vector<4x512xf32>
    %cst_71 = arith.constant 1.000000e+00 : f32
    %106 = vector.broadcast %cst_71 : f32 to vector<4x512xf32>
    %107 = arith.addf %106, %105 : vector<4x512xf32>
    %108 = arith.divf %106, %107 : vector<4x512xf32>
    %cst_72 = arith.constant 1.000000e-03 : f32
    %109 = vector.broadcast %cst_72 : f32 to vector<4x512xf32>
    %110 = arith.addf %108, %109 : vector<4x512xf32>
    %111 = arith.mulf %110, %77 : vector<4x512xf32>
    %112 = arith.addf %111, %96 : vector<4x512xf32>
    %113 = arith.mulf %78, %110 : vector<4x512xf32>
    %114 = arith.truncf %112 : vector<4x512xf32> to vector<4x512xbf16>
    %c1_73 = arith.constant 1 : index
    %c0_74 = arith.constant 0 : index
    %c0_75 = arith.constant 0 : index
    %115 = vector.load %arg8[%c1_73, %c0_74, %c0_75] : memref<2x32x4xbf16, #tpu.memory_space<vmem>>, vector<1x32x4xbf16>
    %116 = vector.shape_cast %115 : vector<1x32x4xbf16> to vector<32x4xbf16>
    %cst_76 = arith.constant dense<0.000000e+00> : vector<32x512xf32>
    %117 = tpu.matmul %116, %114, %cst_76 {dimension_numbers = #tpu.dot_dimension_numbers<[1], [0], [0], [1], [0, 0, 1, 1], [], []>} : vector<32x4xbf16>, vector<4x512xbf16>, vector<32x512xf32> -> vector<32x512xf32>
    %c1_77 = arith.constant 1 : index
    %c0_78 = arith.constant 0 : index
    %c0_79 = arith.constant 0 : index
    %118 = vector.load %arg9[%c1_77, %c0_78, %c0_79] : memref<2x32x1xf32, #tpu.memory_space<vmem>>, vector<1x32x1xf32>
    %119 = vector.shape_cast %118 : vector<1x32x1xf32> to vector<32x1xf32>
    %120 = vector.broadcast %119 : vector<32x1xf32> to vector<32x512xf32>
    %121 = arith.addf %117, %120 : vector<32x512xf32>
    %cst_80 = arith.constant 0.000000e+00 : f32
    %122 = vector.broadcast %cst_80 : f32 to vector<32x512xf32>
    %123 = arith.maximumf %121, %122 : vector<32x512xf32>
    %124 = arith.truncf %123 : vector<32x512xf32> to vector<32x512xbf16>
    %c1_81 = arith.constant 1 : index
    %c0_82 = arith.constant 0 : index
    %c0_83 = arith.constant 0 : index
    %125 = vector.load %arg10[%c1_81, %c0_82, %c0_83] : memref<2x4x32xbf16, #tpu.memory_space<vmem>>, vector<1x4x32xbf16>
    %126 = vector.shape_cast %125 : vector<1x4x32xbf16> to vector<4x32xbf16>
    %cst_84 = arith.constant dense<0.000000e+00> : vector<4x512xf32>
    %127 = tpu.matmul %126, %124, %cst_84 {dimension_numbers = #tpu.dot_dimension_numbers<[1], [0], [0], [1], [0, 0, 1, 1], [], []>} : vector<4x32xbf16>, vector<32x512xbf16>, vector<4x512xf32> -> vector<4x512xf32>
    %c1_85 = arith.constant 1 : index
    %c0_86 = arith.constant 0 : index
    %c0_87 = arith.constant 0 : index
    %128 = vector.load %arg11[%c1_85, %c0_86, %c0_87] : memref<2x4x1xf32, #tpu.memory_space<vmem>>, vector<1x4x1xf32>
    %129 = vector.shape_cast %128 : vector<1x4x1xf32> to vector<4x1xf32>
    %130 = vector.broadcast %129 : vector<4x1xf32> to vector<4x512xf32>
    %131 = arith.addf %127, %130 : vector<4x512xf32>
    %c1_88 = arith.constant 1 : index
    %c0_89 = arith.constant 0 : index
    %c0_90 = arith.constant 0 : index
    %132 = vector.load %arg12[%c1_88, %c0_89, %c0_90] : memref<2x4x32xbf16, #tpu.memory_space<vmem>>, vector<1x4x32xbf16>
    %133 = vector.shape_cast %132 : vector<1x4x32xbf16> to vector<4x32xbf16>
    %cst_91 = arith.constant dense<0.000000e+00> : vector<4x512xf32>
    %134 = tpu.matmul %133, %124, %cst_91 {dimension_numbers = #tpu.dot_dimension_numbers<[1], [0], [0], [1], [0, 0, 1, 1], [], []>} : vector<4x32xbf16>, vector<32x512xbf16>, vector<4x512xf32> -> vector<4x512xf32>
    %c1_92 = arith.constant 1 : index
    %c0_93 = arith.constant 0 : index
    %c0_94 = arith.constant 0 : index
    %135 = vector.load %arg13[%c1_92, %c0_93, %c0_94] : memref<2x4x1xf32, #tpu.memory_space<vmem>>, vector<1x4x1xf32>
    %136 = vector.shape_cast %135 : vector<1x4x1xf32> to vector<4x1xf32>
    %137 = vector.broadcast %136 : vector<4x1xf32> to vector<4x512xf32>
    %138 = arith.addf %134, %137 : vector<4x512xf32>
    %139 = arith.negf %138 : vector<4x512xf32>
    %140 = math.exp %139 : vector<4x512xf32>
    %cst_95 = arith.constant 1.000000e+00 : f32
    %141 = vector.broadcast %cst_95 : f32 to vector<4x512xf32>
    %142 = arith.addf %141, %140 : vector<4x512xf32>
    %143 = arith.divf %141, %142 : vector<4x512xf32>
    %cst_96 = arith.constant 1.000000e-03 : f32
    %144 = vector.broadcast %cst_96 : f32 to vector<4x512xf32>
    %145 = arith.addf %143, %144 : vector<4x512xf32>
    %cst_97 = arith.constant 1.000000e+00 : f32
    %146 = vector.broadcast %cst_97 : f32 to vector<4x512xf32>
    %147 = arith.select %4, %146, %145 : vector<4x512xi1>, vector<4x512xf32>
    %148 = arith.mulf %147, %112 : vector<4x512xf32>
    %149 = arith.addf %148, %131 : vector<4x512xf32>
    %150 = arith.mulf %113, %147 : vector<4x512xf32>
    %c0_98 = arith.constant 0 : index
    %c0_99 = arith.constant 0 : index
    %151 = vector.load %arg14[%c0_98, %c0_99] : memref<4x512xf32, #tpu.memory_space<vmem>>, vector<4x512xf32>
    tpu.vector_store %arg14[%c0_98, %c0_99], %149 {strides = array<i32>} : memref<4x512xf32, #tpu.memory_space<vmem>>, vector<4x512xf32>,
    %152 = math.log %150 : vector<4x512xf32>
    %cst_100 = arith.constant dense<0.000000e+00> : vector<512xf32>
    %153 = vector.multi_reduction <add>, %152, %cst_100 [0] : vector<4x512xf32> to vector<512xf32>
    %154 = vector.shape_cast %153 : vector<512xf32> to vector<1x512xf32>
    %c0_101 = arith.constant 0 : index
    %c0_102 = arith.constant 0 : index
    %155 = vector.load %arg15[%c0_101, %c0_102] : memref<1x512xf32, #tpu.memory_space<vmem>>, vector<1x512xf32>
    tpu.vector_store %arg15[%c0_101, %c0_102], %154 {strides = array<i32>} : memref<1x512xf32, #tpu.memory_space<vmem>>, vector<1x512xf32>,
    return
  }
  func.func @transform_0(%arg0: i32) -> (i32, i32) {
    %c0_i32 = arith.constant 0 : i32
    %c0_i32_0 = arith.constant 0 : i32
    return %c0_i32, %arg0 : i32, i32
  }
  func.func @transform_1(%arg0: i32) -> (i32, i32, i32) {
    %c0_i32 = arith.constant 0 : i32
    %c0_i32_0 = arith.constant 0 : i32
    %c0_i32_1 = arith.constant 0 : i32
    %c0_i32_2 = arith.constant 0 : i32
    return %c0_i32, %c0_i32_0, %c0_i32_1 : i32, i32, i32
  }
  func.func @transform_2(%arg0: i32) -> (i32, i32, i32) {
    %c0_i32 = arith.constant 0 : i32
    %c0_i32_0 = arith.constant 0 : i32
    %c0_i32_1 = arith.constant 0 : i32
    %c0_i32_2 = arith.constant 0 : i32
    return %c0_i32, %c0_i32_0, %c0_i32_1 : i32, i32, i32
  }
  func.func @transform_3(%arg0: i32) -> (i32, i32, i32) {
    %c0_i32 = arith.constant 0 : i32
    %c0_i32_0 = arith.constant 0 : i32
    %c0_i32_1 = arith.constant 0 : i32
    %c0_i32_2 = arith.constant 0 : i32
    return %c0_i32, %c0_i32_0, %c0_i32_1 : i32, i32, i32
  }
  func.func @transform_4(%arg0: i32) -> (i32, i32, i32) {
    %c0_i32 = arith.constant 0 : i32
    %c0_i32_0 = arith.constant 0 : i32
    %c0_i32_1 = arith.constant 0 : i32
    %c0_i32_2 = arith.constant 0 : i32
    return %c0_i32, %c0_i32_0, %c0_i32_1 : i32, i32, i32
  }
  func.func @transform_5(%arg0: i32) -> (i32, i32, i32) {
    %c0_i32 = arith.constant 0 : i32
    %c0_i32_0 = arith.constant 0 : i32
    %c0_i32_1 = arith.constant 0 : i32
    %c0_i32_2 = arith.constant 0 : i32
    return %c0_i32, %c0_i32_0, %c0_i32_1 : i32, i32, i32
  }
  func.func @transform_6(%arg0: i32) -> (i32, i32, i32) {
    %c0_i32 = arith.constant 0 : i32
    %c0_i32_0 = arith.constant 0 : i32
    %c0_i32_1 = arith.constant 0 : i32
    %c0_i32_2 = arith.constant 0 : i32
    return %c0_i32, %c0_i32_0, %c0_i32_1 : i32, i32, i32
  }
  func.func @transform_7(%arg0: i32) -> (i32, i32, i32) {
    %c0_i32 = arith.constant 0 : i32
    %c0_i32_0 = arith.constant 0 : i32
    %c0_i32_1 = arith.constant 0 : i32
    %c0_i32_2 = arith.constant 0 : i32
    return %c0_i32, %c0_i32_0, %c0_i32_1 : i32, i32, i32
  }
  func.func @transform_8(%arg0: i32) -> (i32, i32, i32) {
    %c0_i32 = arith.constant 0 : i32
    %c0_i32_0 = arith.constant 0 : i32
    %c0_i32_1 = arith.constant 0 : i32
    %c0_i32_2 = arith.constant 0 : i32
    return %c0_i32, %c0_i32_0, %c0_i32_1 : i32, i32, i32
  }
  func.func @transform_9(%arg0: i32) -> (i32, i32, i32) {
    %c0_i32 = arith.constant 0 : i32
    %c0_i32_0 = arith.constant 0 : i32
    %c0_i32_1 = arith.constant 0 : i32
    %c0_i32_2 = arith.constant 0 : i32
    return %c0_i32, %c0_i32_0, %c0_i32_1 : i32, i32, i32
  }
  func.func @transform_10(%arg0: i32) -> (i32, i32, i32) {
    %c0_i32 = arith.constant 0 : i32
    %c0_i32_0 = arith.constant 0 : i32
    %c0_i32_1 = arith.constant 0 : i32
    %c0_i32_2 = arith.constant 0 : i32
    return %c0_i32, %c0_i32_0, %c0_i32_1 : i32, i32, i32
  }
  func.func @transform_11(%arg0: i32) -> (i32, i32, i32) {
    %c0_i32 = arith.constant 0 : i32
    %c0_i32_0 = arith.constant 0 : i32
    %c0_i32_1 = arith.constant 0 : i32
    %c0_i32_2 = arith.constant 0 : i32
    return %c0_i32, %c0_i32_0, %c0_i32_1 : i32, i32, i32
  }
  func.func @transform_12(%arg0: i32) -> (i32, i32, i32) {
    %c0_i32 = arith.constant 0 : i32
    %c0_i32_0 = arith.constant 0 : i32
    %c0_i32_1 = arith.constant 0 : i32
    %c0_i32_2 = arith.constant 0 : i32
    return %c0_i32, %c0_i32_0, %c0_i32_1 : i32, i32, i32
  }
  func.func @transform_13(%arg0: i32) -> (i32, i32) {
    %c0_i32 = arith.constant 0 : i32
    %c0_i32_0 = arith.constant 0 : i32
    return %c0_i32, %arg0 : i32, i32
  }
  func.func @transform_14(%arg0: i32) -> (i32, i32) {
    %c0_i32 = arith.constant 0 : i32
    %c0_i32_0 = arith.constant 0 : i32
    return %c0_i32, %arg0 : i32, i32
  }
}

</mosaic_0001>

<bundles_post_ra>
// kernel: flow_forward.1
= control target key start
LH: loop header
LB: loop body
LE: loop exit
PB: predicated region body
PF: predicated region fallthrough
CT: control target
= control target key end

     0   :  { %20 = vsyncpa [#allocation3], 0  ;;  %s3126_s0 = inlined_call_operand.vmem [shape: f32[4,1024], index: 0, kind: input, shape index: {}]   ;;  %s3127_s1 = inlined_call_operand.vmem [shape: bf16[2,32,4], index: 1, kind: input, shape index: {}]   ;;  %s3128_s2 = inlined_call_operand.vmem [shape: f32[2,32,1], index: 2, kind: input, shape index: {}]   ;;  %s3129_s3 = inlined_call_operand.vmem [shape: bf16[2,4,32], index: 3, kind: input, shape index: {}]   ;;  %s3130_s4 = inlined_call_operand.vmem [shape: f32[2,4,1], index: 4, kind: input, shape index: {}]   ;;  %s3131_s5 = inlined_call_operand.vmem [shape: bf16[2,4,32], index: 5, kind: input, shape index: {}]   ;;  %s3132_s6 = inlined_call_operand.vmem [shape: f32[2,4,1], index: 6, kind: input, shape index: {}]   ;;  %s3133_s7 = inlined_call_operand.vmem [shape: bf16[2,32,4], index: 7, kind: input, shape index: {}]   ;;  %s3134_s8 = inlined_call_operand.vmem [shape: f32[2,32,1], index: 8, kind: input, shape index: {}]   ;;  %s3135_s9 = inlined_call_operand.vmem [shape: bf16[2,4,32], index: 9, kind: input, shape index: {}]   ;;  %s3136_s10 = inlined_call_operand.vmem [shape: f32[2,4,1], index: 10, kind: input, shape index: {}]   ;;  %s3137_s11 = inlined_call_operand.vmem [shape: bf16[2,4,32], index: 11, kind: input, shape index: {}]   ;;  %s3138_s12 = inlined_call_operand.vmem [shape: f32[2,4,1], index: 12, kind: input, shape index: {}]   ;;  %s3139_s13 = inlined_call_operand.vmem [shape: f32[4,1024], index: 13, kind: output, shape index: {0}]   ;;  %s3140_s14 = inlined_call_operand.hbm [shape: f32[1,1024], index: 14, kind: output, shape index: {1}]  }
   0x1   :  { %22 = vsyncpa [#allocation3 + $0x1], 0  ;;  %s2626_s29 = smov 0   ;;  %s2628_s30 = smov 0  }
   0x2   :  { %s2630_s15 = smov 0   ;;  %s2632_s16 = smov 0  }
   0x3 LB: > { %3145 = sst [smem:[#allocation5_spill]] %s2544_s15  ;;  %s2213_s17 = sadd.s32 4294967295, %s2548_s16   ;;  %s2548_s16 = sphi %s2632_s16, %s3152_s16   ;;  %s2544_s15 = sphi %s2630_s15, %s3154_s15   ;;  %s2540_s30 = sphi %s2628_s30, %s3156_s30   ;;  %s2536_s29 = sphi %s2626_s29, %s3155_s29  }
   0x4   : > { %s2214_s18 = sadd.s32 4294967294, %s2548_s16   ;;  %s2649_s19 = sadd.s32 1, %s2548_s16  }
   0x5   : > { %3146 = sst [smem:[#allocation6_spill]] %s2649_s19  ;;  %s339_s20 = sadd.s32 1, %s2544_s15 }
   0x6   : > { %s336_s21 = ssub.s32 %s2548_s16, %s2649_s19  ;;  %p349_p0 = scmp.ne.s32.totalorder %s2544_s15, %s2540_s30 }
   0x7   : > { %p337_p1 = scmp.eq.s32.totalorder %s336_s21, 0  ;;  %p350_p2 = scmp.eq.s32.totalorder %s2213_s17, 1 }
   0x8   : > { %p355_p3 = scmp.ne.s32.totalorder %s2540_s30, %s2536_s29  ;;  %p356_p4 = scmp.eq.s32.totalorder %s2214_s18, 1 }
   0x9   : > { %s2659_s22 = scalar_select %p337_p1, %s2544_s15, %s339_s20  }
   0xa   : > { %p2661_p5 = por %p350_p2, %p349_p0  ;;  %p2665_p6 = por %p356_p4, %p355_p3 }
   0xb   : > { %3147 = sst [smem:[#allocation7_spill]] %s2659_s22  ;;  %p2217_p7 = scmp.ge.s32.totalorder %s2548_s16, 1 }
   0xc   : > { %s3149_s24 = scalar_select %p2665_p6, 1, 0 }
   0xd   : > { %p419_p8 = scmp.lt.s32.totalorder %s2548_s16, 3 }
   0xe   : > { %3150 = sst [smem:[#allocation8_spill]] %s3149_s24 }
   0xf   : > { %p420_p9 = pnand %p2217_p7, %p419_p8 }
  0x10   : > { %s2677_s18 = sshll.u32 (!%p420_p9), %s2213_s17, 2  ;;  %s2506_s26 = scalar_lea.hbm (!%p420_p9), %s3140_s14, 8 }
  0x11   : > { %423 = sbr.rel (%p420_p9) target bundleno = 1503 (0x5df), region = 72  ;;  %p471_p10 = scmp.lt.s32.totalorder (!%p420_p9), %s2677_s18, 7 }
  0x12   : > { %s2125_s19 = scalar_lea.hbm (!%p420_p9), %s3140_s14, %s2677_s18 }
  0x13   : > { %s2129_s17 = sshll.u32 (!%p420_p9), %s2125_s19, 4  ;;  %s2130_s17 = int_to_ptr.hbm [resolvable:$true] %s2129_s17 }
  0x16   : > { %v514_v0 = vld [vmem:[%s3128_s2 + $0x10] sm:$0xff]  ;;  %v512_v1 = vld [vmem:[%s3128_s2] sm:$0xff]  ;;  %v2550_v2 = vmov 0   ;;  %s2681_s20 = scalar_select %p471_p10, %s2677_s18, 7  ;;  %v515_v3 = vld [vmem:[%s3128_s2 + $0x18] sm:$0xff]  ;;  %vm553_vm0 = vcmask 1041408  }
  0x17   : > { %2411 = vset.pattern.permute.xlu0 %v2550_v2  ;;  %2412 = vset.pattern.permute.xlu1 %v2550_v2  ;;  %v513_v4 = vld [vmem:[%s3128_s2 + $0x8] sm:$0xff]  ;;  %v900_v7 = vld [vmem:[%s3134_s8 + $0x10] sm:$0xff]  ;;  %v901_v8 = vld [vmem:[%s3134_s8 + $0x18] sm:$0xff]  ;;  %vm546_vm1 = vcmask 31744   ;;  %vm673_vm2 = vcmask 261120   ;;  %s2500_s18 = sshra.s32 %s2130_s17, 4  ;;  %s2501_s18 = int_to_ptr.hbm [resolvable:$true] %s2500_s18 }
  0x18   : > { %528 = vperm.xlu0 %2411, %v514_v0   ;;  %518 = vperm.xlu1 %2412, %v512_v1   ;;  %s2220_s21 = sshll.u32 %s2681_s20, 2  ;;  %v2363_v19 = vld [vmem:[%s3127_s1] sm:$0xff]  ;;  %v899_v22 = vld [vmem:[%s3134_s8 + $0x8] sm:$0xff]  ;;  %v2285_v24 = vld [vmem:[%s3128_s2 + $0x30] sm:$0xff]  ;;  %s467_s20 = sand.u32 1, %s2540_s30  }
  0x19   : > { %2413 = vset.pattern.permute.xlu2 %v2550_v2  ;;  %s474_s28 = scalar_lea.vmem %s3126_s0, %s2220_s21  ;;  %v1113_v23 = vld [vmem:[%s3138_s12] sm:$0xf]  ;;  %v2286_v25 = vld [vmem:[%s3128_s2 + $0x38] sm:$0xff]  ;;  %v2364_v26 = vld [vmem:[%s3127_s1 + $0x8] sm:$0xff]  ;;  %s3065_s25 = scalar_lea.vmem %s3139_s13, %s2220_s21 }
  0x1a   : > { %v489_v5 = vld [vmem:[%s474_s28] sm:$0xff]  ;;  %v490_v6 = vld [vmem:[%s474_s28 + $0x8] sm:$0xff]  ;;  %v2325_v29 = vld [vmem:[%s3134_s8 + $0x30] sm:$0xff]  ;;  %s2218_s21 = sshll.u32 %s467_s20, 2  ;;  %s2111_s27 = scalar_lea.sflag [#allocation3], %s467_s20 }
  0x1b   : > { %493 = vst [vmem:[#allocation1] ss:$2 sm:$0xff] %v489_v5  ;;  %v2284_v27 = vld [vmem:[%s3128_s2 + $0x28] sm:$0xff]  ;;  %v2310_v28 = vld [vmem:[%s3132_s6 + $0x4] sm:$0xf]  ;;  %v2326_v30 = vld [vmem:[%s3134_s8 + $0x38] sm:$0xff]  ;;  %p2507_p0 = scmp.lt.s32.totalorder %s2501_s18, %s3140_s14 }
  0x1c   : > { %495 = vst [vmem:[#allocation1 + $0x10] ss:$2 sm:$0xff] %v490_v6  ;;  %v2324_v31 = vld [vmem:[%s3134_s8 + $0x28] sm:$0xff]  ;;  %v2350_v32 = vld [vmem:[%s3138_s12 + $0x4] sm:$0xf]  ;;  %s469_s22 = scalar_lea.vmem [#allocation2], %s2218_s21 }
  0x1d   : > { %v730_v41 = vld [vmem:[%s3132_s6] sm:$0xf]  ;;  %s2127_s24 = sshll.u32 %s469_s22, 4  ;;  %s2502_s28 = scalar_lea.hbm %s2501_s18, 4  ;;  %s2128_s24 = int_to_ptr.vmem [resolvable:$true] %s2127_s24 }
  0x1e   : > { %733 = vperm.xlu2 %2413, %v730_v41   ;;  %v667_v46 = vld [vmem:[%s3130_s4] sm:$0xf]  ;;  %p2503_p11 = scmp.ne.s32.totalorder %s2501_s18, %s2502_s28  ;;  %p2508_p1 = scmp.lt.s32.totalorder %s2506_s26, %s2502_s28 }
  0x20   : > { %533 = vperm.xlu0 %2411, %v515_v3   ;;  %523 = vperm.xlu1 %2412, %v513_v4   ;;  %p2504_p12 = pnand %p2503_p11, %p2661_p5  ;;  %p2509_p2 = por %p2508_p1, %p2507_p0 }
  0x22   : > { %v496_v9 = vld.sshfl [vmem:[#allocation1] sm:$0xff pattern:$0x75316420]  ;;  %v497_v10 = vld.sshfl [vmem:[#allocation1 + $0x8] sm:$0xff pattern:$0x75316420]  ;;  %p2505_p13 = pneg %p2504_p12 }
  0x23   : > { %v504_v11 = vpack.c.bf16 %v496_v9, %v496_v9  ;;  %v505_v12 = vpack.c.bf16 %v497_v10, %v497_v10  ;;  %871 = vst [vmem:[#allocation1] ss:$2 sm:$0xff] %v489_v5  ;;  %v498_v13 = vld.sshfl [vmem:[#allocation1 + $0x10] sm:$0xff pattern:$0x75316420] }
  0x24   : > { %v506_v14 = vpack.c.bf16 %v498_v13, %v498_v13  ;;  %v499_v15 = vld.sshfl [vmem:[#allocation1 + $0x18] sm:$0xff pattern:$0x75316420]  ;;  %p2510_p3 = pnand %p2509_p2, %p2505_p13 }
  0x25   : > { %v555_v16 = vsel %vm553_vm0, %v504_v11, 0  ;;  %v558_v17 = vsel %vm553_vm0, %v505_v12, 0  ;;  %v507_v18 = vpack.c.bf16 %v499_v15, %v499_v15  ;;  %873 = vst [vmem:[#allocation1 + $0x10] ss:$2 sm:$0xff] %v490_v6 }
  0x26   : > { %573 = vmatpush.bf16.msra.mxu0 %v555_v16  ;;  %592 = vmatpush.bf16.msra.mxu1 %v558_v17  ;;  %v561_v20 = vsel %vm553_vm0, %v506_v14, 0 }
  0x27   : > { %611 = vmatpush.bf16.msra.mxu2 %v561_v20  ;;  %v564_v21 = vsel %vm553_vm0, %v507_v18, 0  ;;  %670 = vperm.xlu2 %2413, %v667_v46  }
  0x28   : > { %914 = vperm.xlu0 %2411, %v900_v7   ;;  %919 = vperm.xlu1 %2412, %v901_v8   ;;  %v898_v8 = vld [vmem:[%s3134_s8] sm:$0xff] }
  0x29   : > { %630 = vmatpush.bf16.msra.mxu3 %v564_v21  ;;  %2231 = vmatmul.msk.bf16.vlgmr.msra.gmra.mxu0 %vm546_vm1, %v2363_v19 }
  0x2a   : > { %2233 = vmatmul.msk.bf16.vlgmr.msra.gmra.mxu1 %vm546_vm1, %v2363_v19  ;;  %2235 = vmatmul.msk.bf16.vlgmr.msra.gmra.mxu2 %vm546_vm1, %v2363_v19 }
  0x2c   : > { %2237 = vmatmul.msk.bf16.vlgmr.msra.gmra.mxu3 %vm546_vm1, %v2363_v19 }
  0x2f   : > { %904 = vperm.xlu2 %2413, %v898_v8  }
  0x30   : > { %909 = vperm.xlu0 %2411, %v899_v22   ;;  %1116 = vperm.xlu1 %2412, %v1113_v23  }
  0x38   : > { %1296 = vperm.xlu0 %2411, %v2285_v24   ;;  %1301 = vperm.xlu1 %2412, %v2286_v25   ;;  %v666_v24 = vld [vmem:[%s3129_s3] sm:$0x3] }
  0x39   : > { %2232 = vmatmul.msk.bf16.gmra.mxu0 %vm546_vm1, %v2364_v26 }
  0x3a   : > { %2234 = vmatmul.msk.bf16.gmra.mxu1 %vm546_vm1, %v2364_v26  ;;  %2236 = vmatmul.msk.bf16.gmra.mxu2 %vm546_vm1, %v2364_v26 }
  0x3c   : > { %2238 = vmatmul.msk.bf16.gmra.mxu3 %vm546_vm1, %v2364_v26 }
  0x40   : > { %1291 = vperm.xlu0 %2411, %v2284_v27   ;;  %1502 = vperm.xlu1 %2412, %v2310_v28  }
  0x48   : > { %1678 = vperm.xlu0 %2411, %v2325_v29   ;;  %1683 = vperm.xlu1 %2412, %v2326_v30   ;;  %v1051_v29 = vld [vmem:[%s3136_s10] sm:$0xf] }
  0x49   : > { %1054 = vperm.xlu2 %2413, %v1051_v29  }
  0x50   : > { %1673 = vperm.xlu0 %2411, %v2324_v31   ;;  %1884 = vperm.xlu1 %2412, %v2350_v32  }
  0x8a   : > { %v529_v39 = vpop.permute.xlu0 %528  ;;  %v519_v40 = vpop.permute.xlu1 %518 }
  0x92   : > { %v534_v47 = vpop.permute.xlu0 %533  ;;  %v524_v48 = vpop.permute.xlu1 %523 }
  0xa6   : > { %v575_v33 = vpop.f32.mrf.mxu0 }
  0xa7   : > { %v594_v34 = vpop.f32.mrf.mxu1  ;;  %v576_v54 = vadd.f32 %v575_v33, %v519_v40 }
  0xa8   : > { %v595_v58 = vadd.f32 %v594_v34, %v519_v40  ;;  %v2283_v34 = vld [vmem:[%s3128_s2 + $0x20] sm:$0xff] }
  0xa9   : > { %v642_v1 = vmax.f32 %v576_v54, 0.0  ;;  %1286 = vperm.xlu2 %2413, %v2283_v34  }
  0xaa   : > { %v643_v4 = vmax.f32 %v595_v58, 0.0 }
  0xad   : > { %v613_v35 = vpop.f32.mrf.mxu2 }
  0xae   : > { %v577_v37 = vpop.f32.mrf.mxu0  ;;  %v614_v17 = vadd.f32 %v613_v35, %v519_v40  ;;  %v729_v35 = vld [vmem:[%s3131_s5] sm:$0x3] }
  0xaf   : > { %v632_v36 = vpop.f32.mrf.mxu3  ;;  %v596_v38 = vpop.f32.mrf.mxu1  ;;  %v578_v55 = vadd.f32 %v577_v37, %v524_v48  ;;  %v2323_v37 = vld [vmem:[%s3134_s8 + $0x20] sm:$0xff] }
  0xb0   : > { %v597_v59 = vadd.f32 %v596_v38, %v524_v48  ;;  %v633_v21 = vadd.f32 %v632_v36, %v519_v40  ;;  %v644_v30 = vmax.f32 %v614_v17, 0.0  ;;  %v2304_v36 = vld [vmem:[%s3130_s4 + $0x4] sm:$0xf] }
  0xb1   : > { %v646_v2 = vmax.f32 %v578_v55, 0.0  ;;  %1438 = vperm.xlu2 %2413, %v2304_v36   ;;  %v2344_v38 = vld [vmem:[%s3136_s10 + $0x4] sm:$0xf] }
  0xb2   : > { %v647_v5 = vmax.f32 %v597_v59, 0.0  ;;  %v645_v31 = vmax.f32 %v633_v21, 0.0 }
  0xb3   : > { %v658_v16 = vpack.c.bf16 %v646_v2, %v642_v1 }
  0xb4   : > { %v659_v20 = vpack.c.bf16 %v647_v5, %v643_v4 }
  0xb5   : > { %v615_v42 = vpop.f32.mrf.mxu2 }
  0xb6   : > { %v580_v44 = vpop.f32.mrf.mxu0  ;;  %v616_v11 = vadd.f32 %v615_v42, %v524_v48 }
  0xb7   : > { %v634_v43 = vpop.f32.mrf.mxu3  ;;  %v599_v45 = vpop.f32.mrf.mxu1  ;;  %v581_v49 = vadd.f32 %v580_v44, %v529_v39 }
  0xb8   : > { %v600_v51 = vadd.f32 %v599_v45, %v529_v39  ;;  %v635_v14 = vadd.f32 %v634_v43, %v524_v48  ;;  %v648_v25 = vmax.f32 %v616_v11, 0.0  ;;  %v734_v45 = vpop.permute.xlu2 %733 }
  0xb9   : > { %v650_v61 = vmax.f32 %v581_v49, 0.0  ;;  %1668 = vperm.xlu2 %2413, %v2323_v37  }
  0xba   : > { %v651_v63 = vmax.f32 %v600_v51, 0.0  ;;  %v649_v27 = vmax.f32 %v635_v14, 0.0  ;;  %v660_v32 = vpack.c.bf16 %v648_v25, %v644_v30  ;;  %v875_v30 = vld.sshfl [vmem:[#allocation1 + $0x8] sm:$0xff pattern:$0x75316420] }
  0xbc   : > { %v661_v33 = vpack.c.bf16 %v649_v27, %v645_v31 }
  0xbd   : > { %v618_v50 = vpop.f32.mrf.mxu2 }
  0xbe   : > { %v582_v53 = vpop.f32.mrf.mxu0  ;;  %v619_v6 = vadd.f32 %v618_v50, %v529_v39 }
  0xbf   : > { %v637_v52 = vpop.f32.mrf.mxu3  ;;  %v583_v56 = vadd.f32 %v582_v53, %v534_v47  ;;  %v601_v57 = vpop.f32.mrf.mxu1 }
  0xc0   : > { %v602_v60 = vadd.f32 %v601_v57, %v534_v47  ;;  %v638_v9 = vadd.f32 %v637_v52, %v529_v39  ;;  %v652_v18 = vmax.f32 %v619_v6, 0.0  ;;  %v671_v31 = vpop.permute.xlu2 %670 }
  0xc1   : > { %v654_v62 = vmax.f32 %v583_v56, 0.0  ;;  %1820 = vperm.xlu2 %2413, %v2344_v38  }
  0xc2   : > { %v655_v0 = vmax.f32 %v602_v60, 0.0  ;;  %v653_v22 = vmax.f32 %v638_v9, 0.0 }
  0xc3   : > { %v662_v3 = vpack.c.bf16 %v654_v62, %v650_v61 }
  0xc4   : > { %v663_v7 = vpack.c.bf16 %v655_v0, %v651_v63 }
  0xc5   : > { %v620_v10 = vpop.f32.mrf.mxu2  ;;  %683 = vmatpush.bf16.msrb.mxu0 %v662_v3 }
  0xc6   : > { %v621_v12 = vadd.f32 %v620_v10, %v534_v47  ;;  %696 = vmatpush.bf16.msrb.mxu1 %v663_v7 }
  0xc7   : > { %v639_v13 = vpop.f32.mrf.mxu3 }
  0xc8   : > { %v640_v15 = vadd.f32 %v639_v13, %v534_v47  ;;  %v656_v19 = vmax.f32 %v621_v12, 0.0 }
  0xc9   : > { %684 = vmatpush.bf16.msrb.mxu0 %v658_v16 }
  0xca   : > { %v657_v23 = vmax.f32 %v640_v15, 0.0  ;;  %697 = vmatpush.bf16.msrb.mxu1 %v659_v20  ;;  %v664_v26 = vpack.c.bf16 %v656_v19, %v652_v18 }
  0xcc   : > { %v665_v28 = vpack.c.bf16 %v657_v23, %v653_v22  ;;  %709 = vmatpush.bf16.msrb.mxu2 %v664_v26  ;;  %2239 = vmatmul.msk.bf16.vlgmr.msrb.gmra.mxu0 %vm673_vm2, %v666_v24 }
  0xcd   : > { %745 = vmatpush.bf16.msra.mxu0 %v662_v3  ;;  %2240 = vmatmul.msk.bf16.vlgmr.msrb.gmra.mxu1 %vm673_vm2, %v666_v24 }
  0xce   : > { %758 = vmatpush.bf16.msra.mxu1 %v663_v7  ;;  %722 = vmatpush.bf16.msrb.mxu3 %v665_v28 }
  0xd0   : > { %710 = vmatpush.bf16.msrb.mxu2 %v660_v32 }
  0xd1   : > { %746 = vmatpush.bf16.msra.mxu0 %v658_v16 }
  0xd2   : > { %759 = vmatpush.bf16.msra.mxu1 %v659_v20  ;;  %723 = vmatpush.bf16.msrb.mxu3 %v661_v33 }
  0xd3   : > { %2241 = vmatmul.msk.bf16.vlgmr.msrb.gmra.mxu2 %vm673_vm2, %v666_v24 }
  0xd4   : > { %771 = vmatpush.bf16.msra.mxu2 %v664_v26  ;;  %v874_v26 = vld.sshfl [vmem:[#allocation1] sm:$0xff pattern:$0x75316420] }
  0xd5   : > { %2242 = vmatmul.msk.bf16.vlgmr.msrb.gmra.mxu3 %vm673_vm2, %v666_v24 }
  0xd6   : > { %784 = vmatpush.bf16.msra.mxu3 %v665_v28 }
  0xd8   : > { %772 = vmatpush.bf16.msra.mxu2 %v660_v32 }
  0xda   : > { %785 = vmatpush.bf16.msra.mxu3 %v661_v33 }
  0xdc   : > { %2243 = vmatmul.msk.bf16.vlgmr.msra.gmra.mxu0 %vm673_vm2, %v729_v35 }
  0xdd   : > { %2244 = vmatmul.msk.bf16.vlgmr.msra.gmra.mxu1 %vm673_vm2, %v729_v35 }
  0xe3   : > { %2245 = vmatmul.msk.bf16.vlgmr.msra.gmra.mxu2 %vm673_vm2, %v729_v35 }
  0xe5   : > { %2246 = vmatmul.msk.bf16.vlgmr.msra.gmra.mxu3 %vm673_vm2, %v729_v35 }
 0x149   : > { %v2787_v39 = vpop.f32.mrf.mxu0 }
 0x14a   : > { %v2789_v40 = vpop.f32.mrf.mxu1  ;;  %v687_v34 = vadd.f32 %v2787_v39, %v671_v31 }
 0x14b   : > { %v700_v37 = vadd.f32 %v2789_v40, %v671_v31 }
 0x151   : > { %v688_v41 = vpop.f32.mrf.mxu0 }
 0x152   : > { %v701_v42 = vpop.f32.mrf.mxu1 }
 0x156   : > { %v2791_v43 = vpop.f32.mrf.mxu2 }
 0x158   : > { %v2793_v44 = vpop.f32.mrf.mxu3 }
 0x159   : > { %v748_v46 = vpop.f32.mrf.mxu0 }
 0x15a   : > { %v749_v47 = vadd.f32 %v748_v46, %v734_v45  ;;  %v761_v48 = vpop.f32.mrf.mxu1 }
 0x15b   : > { %v762_v49 = vadd.f32 %v761_v48, %v734_v45 }
 0x15c   : > { %v2247_v50 = vmul.f32 -1.442695, %v749_v47 }
 0x15d   : > { %v2248_v51 = vmul.f32 -1.442695, %v762_v49 }
 0x15e   : > { %2414 = vpow2.f32 %v2247_v50  ;;  %v714_v52 = vpop.f32.mrf.mxu2 }
 0x15f   : > { %2416 = vpow2.f32 %v2248_v51 }
 0x160   : > { %v727_v53 = vpop.f32.mrf.mxu3 }
 0x161   : > { %v750_v54 = vpop.f32.mrf.mxu0 }
 0x162   : > { %v763_v55 = vpop.f32.mrf.mxu1 }
 0x163   : > { %v2365_v55 = vld [vmem:[%s3133_s7] sm:$0xff] }
 0x164   : > { %v2415_v56 = vpop.eup %2414 }
 0x165   : > { %v2417_v57 = vpop.eup %2416  ;;  %v803_v58 = vadd.f32 1.0, %v2415_v56 }
 0x166   : > { %v804_v59 = vadd.f32 1.0, %v2417_v57  ;;  %v774_v60 = vpop.f32.mrf.mxu2 }
 0x167   : > { %2418 = vrcp.f32 %v803_v58  ;;  %v775_v61 = vadd.f32 %v774_v60, %v734_v45  ;;  %vm812_vm3 = vweird.f32 %v803_v58  ;;  %v818_v6 = vand.u32 2147483648, %v803_v58 }
 0x168   : > { %v787_v62 = vpop.f32.mrf.mxu3  ;;  %2420 = vrcp.f32 %v804_v59  ;;  %v833_v10 = vand.u32 2147483648, %v804_v59  ;;  %v816_v11 = vand.u32 2147483647, %v803_v58  ;;  %vm827_vm5 = vweird.f32 %v804_v59 }
 0x169   : > { %v788_v63 = vadd.f32 %v787_v62, %v734_v45  ;;  %v2249_v0 = vmul.f32 -1.442695, %v775_v61  ;;  %v831_v14 = vand.u32 2147483647, %v804_v59  ;;  %v819_v20 = vor.u32 1.1754944e-38, %v818_v6 }
 0x16a   : > { %vm817_vm8 = vcmp.eq.f32.partialorder %v816_v11, 8.507059e+37  ;;  %v834_v22 = vor.u32 1.1754944e-38, %v833_v10  ;;  %v713_v6 = vadd.f32 %v2791_v43, %v671_v31 }
 0x16b   : > { %v2250_v1 = vmul.f32 -1.442695, %v788_v63  ;;  %2422 = vpow2.f32 %v2249_v0  ;;  %vm832_vm10 = vcmp.eq.f32.partialorder %v831_v14, 8.507059e+37  ;;  %v876_v0 = vld.sshfl [vmem:[#allocation1 + $0x10] sm:$0xff pattern:$0x75316420] }
 0x16d   : > { %2424 = vpow2.f32 %v2250_v1  ;;  %v2419_v2 = vpop.eup %2418 }
 0x16e   : > { %v2421_v3 = vpop.eup %2420  ;;  %v808_v4 = vmul.f32 %v2419_v2, %v803_v58  ;;  %v776_v5 = vpop.f32.mrf.mxu2  ;;  %vm813_vm4 = vweird.f32 %v2419_v2 }
 0x16f   : > { %v823_v7 = vmul.f32 %v2421_v3, %v804_v59  ;;  %vm828_vm6 = vweird.f32 %v2421_v3  ;;  %vm814_vm7 = vmor %vm812_vm3, %vm813_vm4 }
 0x170   : > { %v789_v8 = vpop.f32.mrf.mxu3  ;;  %v809_v9 = vsub.f32 1.0, %v808_v4  ;;  %vm829_vm9 = vmor %vm827_vm5, %vm828_vm6  ;;  %v877_v4 = vld.sshfl [vmem:[#allocation1 + $0x18] sm:$0xff pattern:$0x75316420] }
 0x171   : > { %v2423_v12 = vpop.eup %2422  ;;  %v824_v13 = vsub.f32 1.0, %v823_v7  ;;  %v726_v8 = vadd.f32 %v2793_v44, %v671_v31  ;;  %v2366_v44 = vld [vmem:[%s3133_s7 + $0x8] sm:$0xff] }
 0x172   : > { %v810_v16 = vmul.f32 %v2419_v2, %v809_v9  ;;  %v805_v17 = vadd.f32 1.0, %v2423_v12 }
 0x173   : > { %v2425_v15 = vpop.eup %2424  ;;  %v825_v18 = vmul.f32 %v2421_v3, %v824_v13 }
 0x174   : > { %v806_v19 = vadd.f32 1.0, %v2425_v15  ;;  %2426 = vrcp.f32 %v805_v17  ;;  %v811_v21 = vadd.f32 %v2419_v2, %v810_v16  ;;  %v848_v48 = vand.u32 2147483648, %v805_v17 }
 0x175   : > { %v826_v23 = vadd.f32 %v2421_v3, %v825_v18  ;;  %v846_v40 = vand.u32 2147483647, %v805_v17  ;;  %vm842_vm13 = vweird.f32 %v805_v17 }
 0x176   : > { %2428 = vrcp.f32 %v806_v19  ;;  %v815_v24 = vsel %vm814_vm7, %v2419_v2, %v811_v21  ;;  %v863_v50 = vand.u32 2147483648, %v806_v19  ;;  %v861_v56 = vand.u32 2147483647, %v806_v19 }
 0x177   : > { %v820_v25 = vsel %vm817_vm8, %v819_v20, %v815_v24  ;;  %v830_v27 = vsel %vm829_vm9, %v2421_v3, %v826_v23  ;;  %vm857_vm14 = vweird.f32 %v806_v19  ;;  %v849_v59 = vor.u32 1.1754944e-38, %v848_v48  ;;  %v920_v24 = vpop.permute.xlu1 %919 }
 0x178   : > { %v2796_v28 = vadd.f32 0.001, %v820_v25  ;;  %v835_v29 = vsel %vm832_vm10, %v834_v22, %v830_v27  ;;  %vm847_vm3 = vcmp.eq.f32.partialorder %v846_v40, 8.507059e+37  ;;  %v864_v62 = vor.u32 1.1754944e-38, %v863_v50 }
 0x179   : > { %v2798_v32 = vadd.f32 0.001, %v835_v29  ;;  %vm862_vm5 = vcmp.eq.f32.partialorder %v861_v56, 8.507059e+37 }
 0x17a   : > { %v2427_v33 = vpop.eup %2426  ;;  %v882_v35 = vmul.f32 %v874_v26, %v2796_v28 }
 0x17b   : > { %v838_v38 = vmul.f32 %v2427_v33, %v805_v17  ;;  %v883_v41 = vmul.f32 %v875_v30, %v2798_v32  ;;  %vm843_vm11 = vweird.f32 %v2427_v33 }
 0x17c   : > { %v2429_v36 = vpop.eup %2428  ;;  %v2804_v45 = vadd.f32 %v882_v35, %v687_v34  ;;  %vm844_vm15 = vmor %vm842_vm13, %vm843_vm11  ;;  %v905_v34 = vpop.permute.xlu2 %904 }
 0x17d   : > { %v853_v42 = vmul.f32 %v2429_v36, %v806_v19  ;;  %v839_v46 = vsub.f32 1.0, %v838_v38  ;;  %v2806_v47 = vadd.f32 %v883_v41, %v700_v37  ;;  %vm858_vm12 = vweird.f32 %v2429_v36  ;;  %v915_v19 = vpop.permute.xlu0 %914 }
 0x17e   : > { %v890_v39 = vpack.c.bf16 %v2804_v45, %v2804_v45  ;;  %vm859_vm4 = vmor %vm857_vm14, %vm858_vm12 }
 0x17f   : > { %v854_v49 = vsub.f32 1.0, %v853_v42  ;;  %v840_v51 = vmul.f32 %v2427_v33, %v839_v46  ;;  %v891_v52 = vpack.c.bf16 %v2806_v47, %v2806_v47 }
 0x180   : > { %v939_v54 = vsel %vm553_vm0, %v890_v39, 0 }
 0x181   : > { %v855_v53 = vmul.f32 %v2429_v36, %v854_v49  ;;  %957 = vmatpush.bf16.msrb.mxu0 %v939_v54  ;;  %v942_v57 = vsel %vm553_vm0, %v891_v52, 0  ;;  %v841_v58 = vadd.f32 %v2427_v33, %v840_v51 }
 0x182   : > { %976 = vmatpush.bf16.msrb.mxu1 %v942_v57 }
 0x183   : > { %v856_v60 = vadd.f32 %v2429_v36, %v855_v53  ;;  %v845_v61 = vsel %vm844_vm15, %v2427_v33, %v841_v58  ;;  %v1050_v58 = vld [vmem:[%s3135_s9] sm:$0x3] }
 0x184   : > { %2259 = vmatmul.msk.bf16.vlgmr.msrb.gmra.mxu0 %vm546_vm1, %v2365_v55  ;;  %v850_v63 = vsel %vm847_vm3, %v849_v59, %v845_v61 }
 0x185   : > { %v860_v1 = vsel %vm859_vm4, %v2429_v36, %v856_v60  ;;  %2261 = vmatmul.msk.bf16.vlgmr.msrb.gmra.mxu1 %vm546_vm1, %v2365_v55  ;;  %v2819_v2 = vadd.f32 0.001, %v850_v63  ;;  %v910_v26 = vpop.permute.xlu0 %909 }
 0x186   : > { %v865_v3 = vsel %vm862_vm5, %v864_v62, %v860_v1 }
 0x187   : > { %v2821_v5 = vadd.f32 0.001, %v865_v3  ;;  %v884_v7 = vmul.f32 %v876_v0, %v2819_v2 }
 0x189   : > { %v885_v9 = vmul.f32 %v877_v4, %v2821_v5  ;;  %v2827_v10 = vadd.f32 %v884_v7, %v713_v6 }
 0x18b   : > { %v2829_v11 = vadd.f32 %v885_v9, %v726_v8  ;;  %v892_v12 = vpack.c.bf16 %v2827_v10, %v2827_v10 }
 0x18d   : > { %v893_v13 = vpack.c.bf16 %v2829_v11, %v2829_v11  ;;  %v945_v14 = vsel %vm553_vm0, %v892_v12, 0 }
 0x18e   : > { %995 = vmatpush.bf16.msrb.mxu2 %v945_v14 }
 0x18f   : > { %v948_v43 = vsel %vm553_vm0, %v893_v13, 0 }
 0x190   : > { %1014 = vmatpush.bf16.msrb.mxu3 %v948_v43 }
 0x191   : > { %2263 = vmatmul.msk.bf16.vlgmr.msrb.gmra.mxu2 %vm546_vm1, %v2365_v55 }
 0x193   : > { %2265 = vmatmul.msk.bf16.vlgmr.msrb.gmra.mxu3 %vm546_vm1, %v2365_v55 }
 0x194   : > { %2260 = vmatmul.msk.bf16.gmra.mxu0 %vm546_vm1, %v2366_v44 }
 0x195   : > { %2262 = vmatmul.msk.bf16.gmra.mxu1 %vm546_vm1, %v2366_v44 }
 0x1a1   : > { %2264 = vmatmul.msk.bf16.gmra.mxu2 %vm546_vm1, %v2366_v44 }
 0x1a3   : > { %2266 = vmatmul.msk.bf16.gmra.mxu3 %vm546_vm1, %v2366_v44 }
 0x201   : > { %v959_v15 = vpop.f32.mrf.mxu0 }
 0x202   : > { %v978_v16 = vpop.f32.mrf.mxu1  ;;  %v960_v37 = vadd.f32 %v959_v15, %v905_v34 }
 0x203   : > { %v979_v46 = vadd.f32 %v978_v16, %v905_v34 }
 0x204   : > { %v1026_v53 = vmax.f32 %v960_v37, 0.0 }
 0x205   : > { %v1027_v54 = vmax.f32 %v979_v46, 0.0 }
 0x209   : > { %v961_v17 = vpop.f32.mrf.mxu0 }
 0x20a   : > { %v980_v18 = vpop.f32.mrf.mxu1  ;;  %v962_v30 = vadd.f32 %v961_v17, %v910_v26 }
 0x20b   : > { %v981_v35 = vadd.f32 %v980_v18, %v910_v26  ;;  %v1112_v18 = vld [vmem:[%s3137_s11] sm:$0x3] }
 0x20c   : > { %v1030_v39 = vmax.f32 %v962_v30, 0.0 }
 0x20d   : > { %v1031_v52 = vmax.f32 %v981_v35, 0.0 }
 0x20e   : > { %v1042_v55 = vpack.c.bf16 %v1030_v39, %v1026_v53 }
 0x20f   : > { %v1043_v56 = vpack.c.bf16 %v1031_v52, %v1027_v54 }
 0x211   : > { %v964_v20 = vpop.f32.mrf.mxu0 }
 0x212   : > { %v983_v21 = vpop.f32.mrf.mxu1  ;;  %v965_v25 = vadd.f32 %v964_v20, %v915_v19 }
 0x213   : > { %v984_v27 = vadd.f32 %v983_v21, %v915_v19 }
 0x214   : > { %v997_v22 = vpop.f32.mrf.mxu2  ;;  %v1034_v38 = vmax.f32 %v965_v25, 0.0  ;;  %v1117_v25 = vpop.permute.xlu1 %1116 }
 0x215   : > { %v1035_v48 = vmax.f32 %v984_v27, 0.0  ;;  %v998_v6 = vadd.f32 %v997_v22, %v905_v34 }
 0x216   : > { %v1016_v23 = vpop.f32.mrf.mxu3 }
 0x217   : > { %v1017_v9 = vadd.f32 %v1016_v23, %v905_v34  ;;  %v1028_v16 = vmax.f32 %v998_v6, 0.0 }
 0x219   : > { %v966_v29 = vpop.f32.mrf.mxu0  ;;  %v1029_v17 = vmax.f32 %v1017_v9, 0.0 }
 0x21a   : > { %v967_v31 = vadd.f32 %v966_v29, %v920_v24  ;;  %v985_v33 = vpop.f32.mrf.mxu1 }
 0x21b   : > { %v986_v36 = vadd.f32 %v985_v33, %v920_v24 }
 0x21c   : > { %v1038_v41 = vmax.f32 %v967_v31, 0.0  ;;  %v999_v42 = vpop.f32.mrf.mxu2 }
 0x21d   : > { %v1039_v49 = vmax.f32 %v986_v36, 0.0  ;;  %v1000_v63 = vadd.f32 %v999_v42, %v910_v26 }
 0x21e   : > { %v1018_v50 = vpop.f32.mrf.mxu3  ;;  %v1046_v51 = vpack.c.bf16 %v1038_v41, %v1034_v38 }
 0x21f   : > { %v1047_v40 = vpack.c.bf16 %v1039_v49, %v1035_v48  ;;  %v1019_v3 = vadd.f32 %v1018_v50, %v910_v26  ;;  %v1032_v14 = vmax.f32 %v1000_v63, 0.0  ;;  %v484_v50 = vlaneseq }
 0x220   : > { %1066 = vmatpush.bf16.msra.mxu0 %v1046_v51 }
 0x221   : > { %1079 = vmatpush.bf16.msra.mxu1 %v1047_v40  ;;  %v1033_v44 = vmax.f32 %v1019_v3, 0.0  ;;  %v2869_v54 = vshrl.u32 %v484_v50, 7 }
 0x223   : > { %v1045_v20 = vpack.c.bf16 %v1033_v44, %v1029_v17  ;;  %vm486_vm9 = vcmp.lt.s32.totalorder %v2869_v54, 2 }
 0x224   : > { %v1002_v57 = vpop.f32.mrf.mxu2  ;;  %1067 = vmatpush.bf16.msra.mxu0 %v1042_v55 }
 0x225   : > { %1080 = vmatpush.bf16.msra.mxu1 %v1043_v56  ;;  %v1003_v60 = vadd.f32 %v1002_v57, %v915_v19 }
 0x226   : > { %v1021_v59 = vpop.f32.mrf.mxu3 }
 0x227   : > { %2267 = vmatmul.msk.bf16.vlgmr.msra.gmra.mxu0 %vm673_vm2, %v1050_v58  ;;  %v1022_v61 = vadd.f32 %v1021_v59, %v915_v19  ;;  %v1036_v7 = vmax.f32 %v1003_v60, 0.0  ;;  %v1044_v19 = vpack.c.bf16 %v1032_v14, %v1028_v16  ;;  %v1055_v16 = vpop.permute.xlu2 %1054 }
 0x228   : > { %1128 = vmatpush.bf16.msrb.mxu0 %v1046_v51  ;;  %2268 = vmatmul.msk.bf16.vlgmr.msra.gmra.mxu1 %vm673_vm2, %v1050_v58 }
 0x229   : > { %1141 = vmatpush.bf16.msrb.mxu1 %v1047_v40  ;;  %v1037_v12 = vmax.f32 %v1022_v61, 0.0 }
 0x22c   : > { %1129 = vmatpush.bf16.msrb.mxu0 %v1042_v55  ;;  %v1004_v62 = vpop.f32.mrf.mxu2 }
 0x22d   : > { %1142 = vmatpush.bf16.msrb.mxu1 %v1043_v56  ;;  %v1005_v0 = vadd.f32 %v1004_v62, %v920_v24 }
 0x22e   : > { %v1023_v1 = vpop.f32.mrf.mxu3 }
 0x22f   : > { %v1024_v4 = vadd.f32 %v1023_v1, %v920_v24  ;;  %v1040_v8 = vmax.f32 %v1005_v0, 0.0 }
 0x231   : > { %v1041_v13 = vmax.f32 %v1024_v4, 0.0  ;;  %v1048_v43 = vpack.c.bf16 %v1040_v8, %v1036_v7 }
 0x233   : > { %v1049_v15 = vpack.c.bf16 %v1041_v13, %v1037_v12  ;;  %1092 = vmatpush.bf16.msra.mxu2 %v1048_v43 }
 0x235   : > { %1105 = vmatpush.bf16.msra.mxu3 %v1049_v15 }
 0x237   : > { %1093 = vmatpush.bf16.msra.mxu2 %v1044_v19  ;;  %2271 = vmatmul.msk.bf16.vlgmr.msrb.gmra.mxu0 %vm673_vm2, %v1112_v18 }
 0x238   : > { %2272 = vmatmul.msk.bf16.vlgmr.msrb.gmra.mxu1 %vm673_vm2, %v1112_v18 }
 0x239   : > { %1106 = vmatpush.bf16.msra.mxu3 %v1045_v20 }
 0x23a   : > { %2269 = vmatmul.msk.bf16.vlgmr.msra.gmra.mxu2 %vm673_vm2, %v1050_v58 }
 0x23b   : > { %1154 = vmatpush.bf16.msrb.mxu2 %v1048_v43 }
 0x23c   : > { %2270 = vmatmul.msk.bf16.vlgmr.msra.gmra.mxu3 %vm673_vm2, %v1050_v58 }
 0x23d   : > { %1167 = vmatpush.bf16.msrb.mxu3 %v1049_v15 }
 0x23f   : > { %1155 = vmatpush.bf16.msrb.mxu2 %v1044_v19 }
 0x241   : > { %1168 = vmatpush.bf16.msrb.mxu3 %v1045_v20 }
 0x24a   : > { %2273 = vmatmul.msk.bf16.vlgmr.msrb.gmra.mxu2 %vm673_vm2, %v1112_v18 }
 0x24c   : > { %2274 = vmatmul.msk.bf16.vlgmr.msrb.gmra.mxu3 %vm673_vm2, %v1112_v18 }
 0x2a4   : > { %v2860_v21 = vpop.f32.mrf.mxu0 }
 0x2a5   : > { %v2862_v22 = vpop.f32.mrf.mxu1  ;;  %v1070_v19 = vadd.f32 %v2860_v21, %v1055_v16 }
 0x2ac   : > { %v1071_v23 = vpop.f32.mrf.mxu0 }
 0x2ad   : > { %v1084_v24 = vpop.f32.mrf.mxu1 }
 0x2b4   : > { %v1131_v26 = vpop.f32.mrf.mxu0 }
 0x2b5   : > { %v1132_v27 = vadd.f32 %v1131_v26, %v1117_v25  ;;  %v1144_v29 = vpop.f32.mrf.mxu1 }
 0x2b6   : > { %v1145_v30 = vadd.f32 %v1144_v29, %v1117_v25 }
 0x2b7   : > { %v2275_v31 = vmul.f32 -1.442695, %v1132_v27 }
 0x2b8   : > { %v2276_v33 = vmul.f32 -1.442695, %v1145_v30 }
 0x2b9   : > { %2430 = vpow2.f32 %v2275_v31 }
 0x2ba   : > { %2432 = vpow2.f32 %v2276_v33 }
 0x2bc   : > { %v1133_v34 = vpop.f32.mrf.mxu0 }
 0x2bd   : > { %v2864_v35 = vpop.f32.mrf.mxu2  ;;  %v1146_v36 = vpop.f32.mrf.mxu1 }
 0x2bf   : > { %v2866_v37 = vpop.f32.mrf.mxu3  ;;  %v2431_v38 = vpop.eup %2430 }
 0x2c0   : > { %v2433_v41 = vpop.eup %2432  ;;  %v1186_v42 = vadd.f32 1.0, %v2431_v38 }
 0x2c1   : > { %v1187_v46 = vadd.f32 1.0, %v2433_v41 }
 0x2c2   : > { %2434 = vrcp.f32 %v1186_v42  ;;  %v1201_v55 = vand.u32 2147483648, %v1186_v42  ;;  %v1199_v60 = vand.u32 2147483647, %v1186_v42  ;;  %vm1195_vm8 = vweird.f32 %v1186_v42 }
 0x2c3   : > { %2436 = vrcp.f32 %v1187_v46  ;;  %v1216_v58 = vand.u32 2147483648, %v1187_v46  ;;  %v1214_v0 = vand.u32 2147483647, %v1187_v46  ;;  %vm1210_vm11 = vweird.f32 %v1187_v46 }
 0x2c4   : > { %v1202_v4 = vor.u32 1.1754944e-38, %v1201_v55  ;;  %vm1200_vm13 = vcmp.eq.f32.partialorder %v1199_v60, 8.507059e+37 }
 0x2c5   : > { %v1097_v48 = vpop.f32.mrf.mxu2  ;;  %v1217_v8 = vor.u32 1.1754944e-38, %v1216_v58  ;;  %vm1215_vm14 = vcmp.eq.f32.partialorder %v1214_v0, 8.507059e+37 }
 0x2c7   : > { %v1110_v49 = vpop.f32.mrf.mxu3 }
 0x2c8   : > { %v2435_v39 = vpop.eup %2434 }
 0x2c9   : > { %v2437_v51 = vpop.eup %2436  ;;  %v1191_v52 = vmul.f32 %v2435_v39, %v1186_v42  ;;  %vm1196_vm6 = vweird.f32 %v2435_v39 }
 0x2ca   : > { %v1206_v40 = vmul.f32 %v2437_v51, %v1187_v46  ;;  %vm1211_vm7 = vweird.f32 %v2437_v51  ;;  %vm1197_vm10 = vmor %vm1195_vm8, %vm1196_vm6 }
 0x2cb   : > { %v1192_v53 = vsub.f32 1.0, %v1191_v52  ;;  %vm1212_vm12 = vmor %vm1210_vm11, %vm1211_vm7 }
 0x2cc   : > { %v1207_v56 = vsub.f32 1.0, %v1206_v40 }
 0x2cd   : > { %v1193_v57 = vmul.f32 %v2435_v39, %v1192_v53  ;;  %v1157_v59 = vpop.f32.mrf.mxu2 }
 0x2ce   : > { %v1208_v61 = vmul.f32 %v2437_v51, %v1207_v56  ;;  %v1158_v62 = vadd.f32 %v1157_v59, %v1117_v25 }
 0x2cf   : > { %v1170_v63 = vpop.f32.mrf.mxu3  ;;  %v1194_v3 = vadd.f32 %v2435_v39, %v1193_v57 }
 0x2d0   : > { %v1171_v1 = vadd.f32 %v1170_v63, %v1117_v25  ;;  %v2277_v6 = vmul.f32 -1.442695, %v1158_v62  ;;  %v1209_v7 = vadd.f32 %v2437_v51, %v1208_v61  ;;  %v1083_v25 = vadd.f32 %v2862_v22, %v1055_v16  ;;  %v2368_v63 = vld [vmem:[%s3127_s1 + $0x18] sm:$0xff] }
 0x2d1   : > { %v1198_v12 = vsel %vm1197_vm10, %v2435_v39, %v1194_v3 }
 0x2d2   : > { %v2278_v9 = vmul.f32 -1.442695, %v1171_v1  ;;  %2438 = vpow2.f32 %v2277_v6  ;;  %v1203_v13 = vsel %vm1200_vm13, %v1202_v4, %v1198_v12  ;;  %v1213_v14 = vsel %vm1212_vm12, %v2437_v51, %v1209_v7 }
 0x2d3   : > { %v1250_v43 = vadd.f32 0.001, %v1203_v13  ;;  %v1218_v44 = vsel %vm1215_vm14, %v1217_v8, %v1213_v14  ;;  %v1096_v6 = vadd.f32 %v2864_v35, %v1055_v16 }
 0x2d4   : > { %2440 = vpow2.f32 %v2278_v9  ;;  %v1251_v15 = vadd.f32 0.001, %v1218_v44  ;;  %v1109_v9 = vadd.f32 %v2866_v37, %v1055_v16 }
 0x2d5   : > { %v1159_v17 = vpop.f32.mrf.mxu2  ;;  %v2874_v18 = vsel %vm486_vm9, 1.0, %v1250_v43 }
 0x2d6   : > { %v1258_v23 = vmul.f32 %v2874_v18, %v2804_v45  ;;  %v2881_v24 = vsel %vm486_vm9, 1.0, %v1251_v15  ;;  %v1297_v17 = vpop.permute.xlu0 %1296 }
 0x2d7   : > { %v1172_v20 = vpop.f32.mrf.mxu3  ;;  %v1259_v26 = vmul.f32 %v2881_v24, %v2806_v47  ;;  %v2367_v47 = vld [vmem:[%s3127_s1 + $0x10] sm:$0xff] }
 0x2d8   : > { %v2439_v27 = vpop.eup %2438  ;;  %v2886_v29 = vadd.f32 %v1258_v23, %v1070_v19  ;;  %v1302_v23 = vpop.permute.xlu1 %1301 }
 0x2d9   : > { %v1188_v31 = vadd.f32 1.0, %v2439_v27  ;;  %v2888_v33 = vadd.f32 %v1259_v26, %v1083_v25 }
 0x2da   : > { %v2441_v30 = vpop.eup %2440  ;;  %v1270_v45 = vpack.c.bf16 %v2886_v29, %v2886_v29 }
 0x2db   : > { %v1189_v21 = vadd.f32 1.0, %v2441_v30  ;;  %2442 = vrcp.f32 %v1188_v31  ;;  %v1271_v34 = vpack.c.bf16 %v2888_v33, %v2888_v33  ;;  %v1231_v49 = vand.u32 2147483648, %v1188_v31 }
 0x2dc   : > { %v1321_v22 = vsel %vm553_vm0, %v1270_v45, 0  ;;  %v1229_v40 = vand.u32 2147483647, %v1188_v31  ;;  %vm1225_vm4 = vweird.f32 %v1188_v31 }
 0x2dd   : > { %2444 = vrcp.f32 %v1189_v21  ;;  %1339 = vmatpush.bf16.msra.mxu0 %v1321_v22  ;;  %v1324_v36 = vsel %vm553_vm0, %v1271_v34, 0  ;;  %v1246_v52 = vand.u32 2147483648, %v1189_v21  ;;  %v1244_v55 = vand.u32 2147483647, %v1189_v21  ;;  %v1287_v34 = vpop.permute.xlu2 %1286 }
 0x2de   : > { %1358 = vmatpush.bf16.msra.mxu1 %v1324_v36  ;;  %v1232_v57 = vor.u32 1.1754944e-38, %v1231_v49  ;;  %vm1240_vm6 = vweird.f32 %v1189_v21  ;;  %vm1230_vm8 = vcmp.eq.f32.partialorder %v1229_v40, 8.507059e+37  ;;  %v1292_v26 = vpop.permute.xlu0 %1291 }
 0x2df   : > { %v1247_v59 = vor.u32 1.1754944e-38, %v1246_v52  ;;  %vm1245_vm10 = vcmp.eq.f32.partialorder %v1244_v55, 8.507059e+37 }
 0x2e0   : > { %2295 = vmatmul.msk.bf16.vlgmr.msra.gmra.mxu0 %vm546_vm1, %v2367_v47 }
 0x2e1   : > { %v2443_v38 = vpop.eup %2442  ;;  %2297 = vmatmul.msk.bf16.vlgmr.msra.gmra.mxu1 %vm546_vm1, %v2367_v47 }
 0x2e2   : > { %v1221_v42 = vmul.f32 %v2443_v38, %v1188_v31  ;;  %vm1226_vm15 = vweird.f32 %v2443_v38 }
 0x2e3   : > { %v2445_v41 = vpop.eup %2444  ;;  %vm1227_vm5 = vmor %vm1225_vm4, %vm1226_vm15 }
 0x2e4   : > { %v1236_v46 = vmul.f32 %v2445_v41, %v1189_v21  ;;  %v1222_v48 = vsub.f32 1.0, %v1221_v42  ;;  %vm1241_vm3 = vweird.f32 %v2445_v41 }
 0x2e5   : > { %vm1242_vm7 = vmor %vm1240_vm6, %vm1241_vm3 }
 0x2e6   : > { %v1237_v39 = vsub.f32 1.0, %v1236_v46  ;;  %v1223_v51 = vmul.f32 %v2443_v38, %v1222_v48 }
 0x2e8   : > { %v1238_v53 = vmul.f32 %v2445_v41, %v1237_v39  ;;  %v1224_v56 = vadd.f32 %v2443_v38, %v1223_v51 }
 0x2ea   : > { %v1239_v58 = vadd.f32 %v2445_v41, %v1238_v53  ;;  %v1228_v60 = vsel %vm1227_vm5, %v2443_v38, %v1224_v56 }
 0x2eb   : > { %v1233_v61 = vsel %vm1230_vm8, %v1232_v57, %v1228_v60 }
 0x2ec   : > { %v1243_v62 = vsel %vm1242_vm7, %v2445_v41, %v1239_v58  ;;  %v1252_v0 = vadd.f32 0.001, %v1233_v61 }
 0x2ed   : > { %v1248_v1 = vsel %vm1245_vm10, %v1247_v59, %v1243_v62  ;;  %v2303_v59 = vld [vmem:[%s3129_s3 + $0x2] sm:$0x3] }
 0x2ee   : > { %v1253_v3 = vadd.f32 0.001, %v1248_v1  ;;  %v2906_v4 = vsel %vm486_vm9, 1.0, %v1252_v0  ;;  %v2309_v0 = vld [vmem:[%s3131_s5 + $0x2] sm:$0x3] }
 0x2ef   : > { %v1260_v7 = vmul.f32 %v2906_v4, %v2827_v10 }
 0x2f0   : > { %v2913_v8 = vsel %vm486_vm9, 1.0, %v1253_v3  ;;  %2296 = vmatmul.msk.bf16.gmra.mxu0 %vm546_vm1, %v2368_v63 }
 0x2f1   : > { %v1261_v12 = vmul.f32 %v2913_v8, %v2829_v11  ;;  %2298 = vmatmul.msk.bf16.gmra.mxu1 %vm546_vm1, %v2368_v63  ;;  %v2920_v13 = vadd.f32 %v1260_v7, %v1096_v6 }
 0x2f3   : > { %v2922_v14 = vadd.f32 %v1261_v12, %v1109_v9  ;;  %v1272_v10 = vpack.c.bf16 %v2920_v13, %v2920_v13 }
 0x2f5   : > { %v1273_v35 = vpack.c.bf16 %v2922_v14, %v2922_v14  ;;  %v1327_v43 = vsel %vm553_vm0, %v1272_v10, 0 }
 0x2f6   : > { %1377 = vmatpush.bf16.msra.mxu2 %v1327_v43 }
 0x2f7   : > { %v1330_v37 = vsel %vm553_vm0, %v1273_v35, 0 }
 0x2f8   : > { %1396 = vmatpush.bf16.msra.mxu3 %v1330_v37 }
 0x2f9   : > { %2299 = vmatmul.msk.bf16.vlgmr.msra.gmra.mxu2 %vm546_vm1, %v2367_v47 }
 0x2fb   : > { %2301 = vmatmul.msk.bf16.vlgmr.msra.gmra.mxu3 %vm546_vm1, %v2367_v47 }
 0x309   : > { %2300 = vmatmul.msk.bf16.gmra.mxu2 %vm546_vm1, %v2368_v63 }
 0x30b   : > { %2302 = vmatmul.msk.bf16.gmra.mxu3 %vm546_vm1, %v2368_v63 }
 0x35d   : > { %v1341_v11 = vpop.f32.mrf.mxu0 }
 0x35e   : > { %v1360_v44 = vpop.f32.mrf.mxu1  ;;  %v1342_v36 = vadd.f32 %v1341_v11, %v1287_v34 }
 0x35f   : > { %v1361_v42 = vadd.f32 %v1360_v44, %v1287_v34 }
 0x360   : > { %v1408_v40 = vmax.f32 %v1342_v36, 0.0 }
 0x361   : > { %v1409_v55 = vmax.f32 %v1361_v42, 0.0 }
 0x365   : > { %v1343_v15 = vpop.f32.mrf.mxu0 }
 0x366   : > { %v1362_v16 = vpop.f32.mrf.mxu1  ;;  %v1344_v31 = vadd.f32 %v1343_v15, %v1292_v26 }
 0x367   : > { %v1363_v22 = vadd.f32 %v1362_v16, %v1292_v26 }
 0x368   : > { %v1412_v49 = vmax.f32 %v1344_v31, 0.0 }
 0x369   : > { %v1413_v51 = vmax.f32 %v1363_v22, 0.0  ;;  %v2948_v22 = vpop.permute.xlu1 %1502 }
 0x36a   : > { %v1424_v57 = vpack.c.bf16 %v1412_v49, %v1408_v40 }
 0x36b   : > { %v1425_v58 = vpack.c.bf16 %v1413_v51, %v1409_v55 }
 0x36d   : > { %v1346_v19 = vpop.f32.mrf.mxu0 }
 0x36e   : > { %v1365_v20 = vpop.f32.mrf.mxu1  ;;  %v1347_v25 = vadd.f32 %v1346_v19, %v1297_v17 }
 0x36f   : > { %v1366_v27 = vadd.f32 %v1365_v20, %v1297_v17 }
 0x370   : > { %v1416_v38 = vmax.f32 %v1347_v25, 0.0 }
 0x371   : > { %v1417_v46 = vmax.f32 %v1366_v27, 0.0 }
 0x375   : > { %v1348_v30 = vpop.f32.mrf.mxu0 }
 0x376   : > { %v1349_v21 = vadd.f32 %v1348_v30, %v1302_v23  ;;  %v1367_v45 = vpop.f32.mrf.mxu1 }
 0x377   : > { %v1368_v47 = vadd.f32 %v1367_v45, %v1302_v23 }
 0x378   : > { %v1420_v41 = vmax.f32 %v1349_v21, 0.0 }
 0x379   : > { %v1421_v48 = vmax.f32 %v1368_v47, 0.0 }
 0x37a   : > { %v1428_v39 = vpack.c.bf16 %v1420_v41, %v1416_v38 }
 0x37b   : > { %v1429_v52 = vpack.c.bf16 %v1421_v48, %v1417_v46 }
 0x37c   : > { %v1379_v53 = vpop.f32.mrf.mxu2  ;;  %1450 = vmatpush.bf16.msrb.mxu0 %v1428_v39 }
 0x37d   : > { %1463 = vmatpush.bf16.msrb.mxu1 %v1429_v52  ;;  %v1380_v43 = vadd.f32 %v1379_v53, %v1287_v34 }
 0x37e   : > { %v1398_v56 = vpop.f32.mrf.mxu3 }
 0x37f   : > { %v1399_v44 = vadd.f32 %v1398_v56, %v1287_v34  ;;  %v1410_v30 = vmax.f32 %v1380_v43, 0.0 }
 0x380   : > { %1451 = vmatpush.bf16.msrb.mxu0 %v1424_v57 }
 0x381   : > { %1464 = vmatpush.bf16.msrb.mxu1 %v1425_v58 }
 0x383   : > { %2305 = vmatmul.msk.bf16.vlgmr.msrb.gmra.mxu0 %vm673_vm2, %v2303_v59 }
 0x384   : > { %1514 = vmatpush.bf16.msra.mxu0 %v1428_v39  ;;  %v1381_v60 = vpop.f32.mrf.mxu2  ;;  %2306 = vmatmul.msk.bf16.vlgmr.msrb.gmra.mxu1 %vm673_vm2, %v2303_v59 }
 0x385   : > { %1527 = vmatpush.bf16.msra.mxu1 %v1429_v52  ;;  %v1382_v7 = vadd.f32 %v1381_v60, %v1292_v26 }
 0x386   : > { %v1400_v61 = vpop.f32.mrf.mxu3 }
 0x387   : > { %v1401_v10 = vadd.f32 %v1400_v61, %v1292_v26  ;;  %v1414_v19 = vmax.f32 %v1382_v7, 0.0 }
 0x388   : > { %1515 = vmatpush.bf16.msra.mxu0 %v1424_v57 }
 0x389   : > { %1528 = vmatpush.bf16.msra.mxu1 %v1425_v58  ;;  %v1415_v25 = vmax.f32 %v1401_v10, 0.0  ;;  %v1426_v31 = vpack.c.bf16 %v1414_v19, %v1410_v30 }
 0x38c   : > { %v1384_v62 = vpop.f32.mrf.mxu2 }
 0x38d   : > { %v1385_v1 = vadd.f32 %v1384_v62, %v1297_v17 }
 0x38e   : > { %v1403_v63 = vpop.f32.mrf.mxu3 }
 0x38f   : > { %v1404_v3 = vadd.f32 %v1403_v63, %v1297_v17  ;;  %v1418_v37 = vmax.f32 %v1385_v1, 0.0  ;;  %v1411_v17 = vmax.f32 %v1399_v44, 0.0 }
 0x391   : > { %v1419_v15 = vmax.f32 %v1404_v3, 0.0  ;;  %v1427_v21 = vpack.c.bf16 %v1415_v25, %v1411_v17  ;;  %v1267_v25 = vmul.f32 %v2881_v24, %v2798_v32 }
 0x393   : > { %2311 = vmatmul.msk.bf16.vlgmr.msra.gmra.mxu0 %vm673_vm2, %v2309_v0 }
 0x394   : > { %v1386_v6 = vpop.f32.mrf.mxu2  ;;  %2312 = vmatmul.msk.bf16.vlgmr.msra.gmra.mxu1 %vm673_vm2, %v2309_v0 }
 0x395   : > { %v1387_v9 = vadd.f32 %v1386_v6, %v1302_v23 }
 0x396   : > { %v1405_v12 = vpop.f32.mrf.mxu3 }
 0x397   : > { %v1406_v35 = vadd.f32 %v1405_v12, %v1302_v23  ;;  %v1422_v11 = vmax.f32 %v1387_v9, 0.0 }
 0x399   : > { %v1423_v16 = vmax.f32 %v1406_v35, 0.0  ;;  %v1430_v20 = vpack.c.bf16 %v1422_v11, %v1418_v37 }
 0x39b   : > { %v1431_v27 = vpack.c.bf16 %v1423_v16, %v1419_v15  ;;  %1476 = vmatpush.bf16.msrb.mxu2 %v1430_v20  ;;  %v1266_v15 = vmul.f32 %v2874_v18, %v2796_v28 }
 0x39d   : > { %1489 = vmatpush.bf16.msrb.mxu3 %v1431_v27 }
 0x39f   : > { %1477 = vmatpush.bf16.msrb.mxu2 %v1426_v31 }
 0x3a1   : > { %1490 = vmatpush.bf16.msrb.mxu3 %v1427_v21 }
 0x3a2   : > { %2307 = vmatmul.msk.bf16.vlgmr.msrb.gmra.mxu2 %vm673_vm2, %v2303_v59 }
 0x3a3   : > { %1540 = vmatpush.bf16.msra.mxu2 %v1430_v20  ;;  %v2958_v20 = vpop.permute.xlu2 %1438 }
 0x3a4   : > { %2308 = vmatmul.msk.bf16.vlgmr.msrb.gmra.mxu3 %vm673_vm2, %v2303_v59 }
 0x3a5   : > { %1553 = vmatpush.bf16.msra.mxu3 %v1431_v27 }
 0x3a7   : > { %1541 = vmatpush.bf16.msra.mxu2 %v1426_v31 }
 0x3a9   : > { %1554 = vmatpush.bf16.msra.mxu3 %v1427_v21 }
 0x3b2   : > { %2313 = vmatmul.msk.bf16.vlgmr.msra.gmra.mxu2 %vm673_vm2, %v2309_v0 }
 0x3b4   : > { %2314 = vmatmul.msk.bf16.vlgmr.msra.gmra.mxu3 %vm673_vm2, %v2309_v0 }
 0x400   : > { %v1453_v23 = vpop.f32.mrf.mxu0 }
 0x401   : > { %v1466_v26 = vpop.f32.mrf.mxu1  ;;  %v1454_v30 = vadd.f32 %v1453_v23, %v2958_v20 }
 0x402   : > { %v1467_v21 = vadd.f32 %v1466_v26, %v2958_v20 }
 0x408   : > { %v1455_v45 = vpop.f32.mrf.mxu0 }
 0x409   : > { %v1468_v34 = vpop.f32.mrf.mxu1 }
 0x410   : > { %v1517_v47 = vpop.f32.mrf.mxu0 }
 0x411   : > { %v1518_v36 = vadd.f32 %v1517_v47, %v2948_v22  ;;  %v1530_v38 = vpop.f32.mrf.mxu1 }
 0x412   : > { %v1531_v41 = vadd.f32 %v1530_v38, %v2948_v22 }
 0x413   : > { %v2315_v42 = vmul.f32 -1.442695, %v1518_v36  ;;  %v2984_v36 = vld [vmem:[%s3133_s7 + $0x10] sm:$0xff] }
 0x414   : > { %v2316_v46 = vmul.f32 -1.442695, %v1531_v41 }
 0x415   : > { %2446 = vpow2.f32 %v2315_v42 }
 0x416   : > { %2448 = vpow2.f32 %v2316_v46 }
 0x418   : > { %v1519_v48 = vpop.f32.mrf.mxu0 }
 0x419   : > { %v1532_v49 = vpop.f32.mrf.mxu1 }
 0x41b   : > { %v2447_v39 = vpop.eup %2446 }
 0x41c   : > { %v2449_v51 = vpop.eup %2448  ;;  %v1572_v52 = vadd.f32 1.0, %v2447_v39 }
 0x41d   : > { %v1573_v40 = vadd.f32 1.0, %v2449_v51 }
 0x41e   : > { %2450 = vrcp.f32 %v1572_v52  ;;  %v1587_v61 = vand.u32 2147483648, %v1572_v52  ;;  %v1585_v1 = vand.u32 2147483647, %v1572_v52  ;;  %vm1581_vm13 = vweird.f32 %v1572_v52 }
 0x41f   : > { %2452 = vrcp.f32 %v1573_v40  ;;  %v1602_v0 = vand.u32 2147483648, %v1573_v40  ;;  %v1600_v6 = vand.u32 2147483647, %v1573_v40  ;;  %vm1596_vm14 = vweird.f32 %v1573_v40 }
 0x420   : > { %v1588_v9 = vor.u32 1.1754944e-38, %v1587_v61  ;;  %vm1586_vm3 = vcmp.eq.f32.partialorder %v1585_v1, 8.507059e+37 }
 0x421   : > { %v1603_v43 = vor.u32 1.1754944e-38, %v1602_v0  ;;  %vm1601_vm5 = vcmp.eq.f32.partialorder %v1600_v6, 8.507059e+37 }
 0x424   : > { %v2451_v53 = vpop.eup %2450 }
 0x425   : > { %v2453_v55 = vpop.eup %2452  ;;  %v1577_v56 = vmul.f32 %v2451_v53, %v1572_v52  ;;  %v2952_v57 = vpop.f32.mrf.mxu2  ;;  %vm1582_vm11 = vweird.f32 %v2451_v53  ;;  %v2370_v52 = vld [vmem:[%s3133_s7 + $0x18] sm:$0xff] }
 0x426   : > { %v1592_v58 = vmul.f32 %v2453_v55, %v1573_v40  ;;  %vm1597_vm12 = vweird.f32 %v2453_v55  ;;  %vm1583_vm15 = vmor %vm1581_vm13, %vm1582_vm11 }
 0x427   : > { %v2954_v59 = vpop.f32.mrf.mxu3  ;;  %v1578_v60 = vsub.f32 1.0, %v1577_v56  ;;  %vm1598_vm4 = vmor %vm1596_vm14, %vm1597_vm12 }
 0x428   : > { %v1593_v62 = vsub.f32 1.0, %v1592_v58 }
 0x429   : > { %v1579_v63 = vmul.f32 %v2451_v53, %v1578_v60 }
 0x42a   : > { %v1594_v3 = vmul.f32 %v2453_v55, %v1593_v62 }
 0x42b   : > { %v1580_v7 = vadd.f32 %v2451_v53, %v1579_v63 }
 0x42c   : > { %v1595_v12 = vadd.f32 %v2453_v55, %v1594_v3 }
 0x42d   : > { %v1481_v10 = vpop.f32.mrf.mxu2  ;;  %v1584_v35 = vsel %vm1583_vm15, %v2451_v53, %v1580_v7 }
 0x42e   : > { %v1589_v11 = vsel %vm1586_vm3, %v1588_v9, %v1584_v35  ;;  %v1599_v44 = vsel %vm1598_vm4, %v2453_v55, %v1595_v12 }
 0x42f   : > { %v1494_v37 = vpop.f32.mrf.mxu3  ;;  %v1636_v16 = vadd.f32 0.001, %v1589_v11  ;;  %v1604_v19 = vsel %vm1601_vm5, %v1603_v43, %v1599_v44 }
 0x430   : > { %v1637_v27 = vadd.f32 0.001, %v1604_v19  ;;  %v1268_v37 = vmul.f32 %v2906_v4, %v2819_v2  ;;  %v1480_v19 = vadd.f32 %v2952_v57, %v2958_v20 }
 0x431   : > { %v1640_v17 = vmul.f32 %v1636_v16, %v2886_v29  ;;  %v2964_v31 = vmul.f32 %v1636_v16, %v1266_v15  ;;  %v1269_v15 = vmul.f32 %v2913_v8, %v2821_v5 }
 0x432   : > { %v1641_v45 = vmul.f32 %v1637_v27, %v2888_v33  ;;  %v2968_v34 = vmul.f32 %v1637_v27, %v1267_v25 }
 0x433   : > { %v2970_v28 = vadd.f32 %v1640_v17, %v1454_v30  ;;  %v1493_v30 = vadd.f32 %v2954_v59, %v2958_v20 }
 0x434   : > { %v2972_v18 = vadd.f32 %v1641_v45, %v1467_v21 }
 0x435   : > { %v1543_v47 = vpop.f32.mrf.mxu2  ;;  %v1652_v32 = vpack.c.bf16 %v2970_v28, %v2970_v28 }
 0x436   : > { %v1544_v24 = vadd.f32 %v1543_v47, %v2948_v22  ;;  %v1653_v29 = vpack.c.bf16 %v2972_v18, %v2972_v18  ;;  %v1679_v47 = vpop.permute.xlu0 %1678 }
 0x437   : > { %v1556_v23 = vpop.f32.mrf.mxu3  ;;  %v1703_v33 = vsel %vm553_vm0, %v1652_v32, 0 }
 0x438   : > { %v1557_v26 = vadd.f32 %v1556_v23, %v2948_v22  ;;  %v2317_v38 = vmul.f32 -1.442695, %v1544_v24  ;;  %1721 = vmatpush.bf16.msrb.mxu0 %v1703_v33  ;;  %v1706_v41 = vsel %vm553_vm0, %v1653_v29, 0  ;;  %v1684_v23 = vpop.permute.xlu1 %1683 }
 0x439   : > { %1740 = vmatpush.bf16.msrb.mxu1 %v1706_v41 }
 0x43a   : > { %v2318_v42 = vmul.f32 -1.442695, %v1557_v26  ;;  %2454 = vpow2.f32 %v2317_v38 }
 0x43b   : > { %2335 = vmatmul.msk.bf16.vlgmr.msrb.gmra.mxu0 %vm546_vm1, %v2984_v36 }
 0x43c   : > { %2456 = vpow2.f32 %v2318_v42  ;;  %2337 = vmatmul.msk.bf16.vlgmr.msrb.gmra.mxu1 %vm546_vm1, %v2984_v36 }
 0x43d   : > { %v1545_v22 = vpop.f32.mrf.mxu2 }
 0x43e   : > { %v1674_v26 = vpop.permute.xlu0 %1673 }
 0x43f   : > { %v1558_v46 = vpop.f32.mrf.mxu3 }
 0x440   : > { %v2455_v48 = vpop.eup %2454 }
 0x441   : > { %v1574_v39 = vadd.f32 1.0, %v2455_v48 }
 0x442   : > { %v2457_v49 = vpop.eup %2456 }
 0x443   : > { %v1575_v51 = vadd.f32 1.0, %v2457_v49  ;;  %2458 = vrcp.f32 %v1574_v39  ;;  %v1617_v60 = vand.u32 2147483648, %v1574_v39  ;;  %v1615_v0 = vand.u32 2147483647, %v1574_v39 }
 0x444   : > { %vm1611_vm8 = vweird.f32 %v1574_v39 }
 0x445   : > { %2460 = vrcp.f32 %v1575_v51  ;;  %v1632_v63 = vand.u32 2147483648, %v1575_v51  ;;  %v1630_v3 = vand.u32 2147483647, %v1575_v51  ;;  %vm1626_vm10 = vweird.f32 %v1575_v51 }
 0x446   : > { %v1618_v7 = vor.u32 1.1754944e-38, %v1617_v60  ;;  %vm1616_vm12 = vcmp.eq.f32.partialorder %v1615_v0, 8.507059e+37 }
 0x447   : > { %v1633_v10 = vor.u32 1.1754944e-38, %v1632_v63  ;;  %vm1631_vm14 = vcmp.eq.f32.partialorder %v1630_v3, 8.507059e+37 }
 0x449   : > { %v2459_v40 = vpop.eup %2458 }
 0x44a   : > { %v1607_v55 = vmul.f32 %v2459_v40, %v1574_v39  ;;  %vm1612_vm6 = vweird.f32 %v2459_v40 }
 0x44b   : > { %v2461_v53 = vpop.eup %2460  ;;  %2336 = vmatmul.msk.bf16.gmra.mxu0 %vm546_vm1, %v2370_v52  ;;  %vm1613_vm11 = vmor %vm1611_vm8, %vm1612_vm6  ;;  %vm2044_vm8 = vcmask 1043456  }
 0x44c   : > { %v1622_v56 = vmul.f32 %v2461_v53, %v1575_v51  ;;  %v1608_v58 = vsub.f32 1.0, %v1607_v55  ;;  %2338 = vmatmul.msk.bf16.gmra.mxu1 %vm546_vm1, %v2370_v52  ;;  %vm1627_vm7 = vweird.f32 %v2461_v53 }
 0x44d   : > { %vm1628_vm13 = vmor %vm1626_vm10, %vm1627_vm7  ;;  %vm2094_vm10 = vcmask 1040384  }
 0x44e   : > { %v1623_v61 = vsub.f32 1.0, %v1622_v56  ;;  %v1609_v62 = vmul.f32 %v2459_v40, %v1608_v58 }
 0x450   : > { %v1624_v1 = vmul.f32 %v2461_v53, %v1623_v61  ;;  %v1610_v6 = vadd.f32 %v2459_v40, %v1609_v62 }
 0x452   : > { %v1625_v9 = vadd.f32 %v2461_v53, %v1624_v1  ;;  %v1614_v12 = vsel %vm1613_vm11, %v2459_v40, %v1610_v6  ;;  %v2343_v1 = vld [vmem:[%s3135_s9 + $0x2] sm:$0x3] }
 0x453   : > { %v1619_v35 = vsel %vm1616_vm12, %v1618_v7, %v1614_v12 }
 0x454   : > { %v1629_v43 = vsel %vm1628_vm13, %v2461_v53, %v1625_v9  ;;  %v1638_v11 = vadd.f32 0.001, %v1619_v35  ;;  %v2349_v9 = vld [vmem:[%s3137_s11 + $0x2] sm:$0x3] }
 0x455   : > { %v1634_v44 = vsel %vm1631_vm14, %v1633_v10, %v1629_v43 }
 0x456   : > { %v1639_v16 = vadd.f32 0.001, %v1634_v44  ;;  %v1642_v25 = vmul.f32 %v1638_v11, %v2920_v13  ;;  %v3003_v27 = vmul.f32 %v1638_v11, %v1268_v37 }
 0x458   : > { %v1643_v17 = vmul.f32 %v1639_v16, %v2922_v14  ;;  %v3008_v21 = vmul.f32 %v1639_v16, %v1269_v15  ;;  %v3010_v2 = vadd.f32 %v1642_v25, %v1480_v19 }
 0x45a   : > { %v3012_v4 = vadd.f32 %v1643_v17, %v1493_v30  ;;  %v1654_v5 = vpack.c.bf16 %v3010_v2, %v3010_v2 }
 0x45c   : > { %v1655_v8 = vpack.c.bf16 %v3012_v4, %v3012_v4  ;;  %v1709_v13 = vsel %vm553_vm0, %v1654_v5, 0 }
 0x45d   : > { %1759 = vmatpush.bf16.msrb.mxu2 %v1709_v13 }
 0x45e   : > { %v1712_v57 = vsel %vm553_vm0, %v1655_v8, 0 }
 0x45f   : > { %1778 = vmatpush.bf16.msrb.mxu3 %v1712_v57 }
 0x460   : > { %2339 = vmatmul.msk.bf16.vlgmr.msrb.gmra.mxu2 %vm546_vm1, %v2984_v36 }
 0x462   : > { %2341 = vmatmul.msk.bf16.vlgmr.msrb.gmra.mxu3 %vm546_vm1, %v2984_v36  ;;  %v1669_v36 = vpop.permute.xlu2 %1668 }
 0x470   : > { %2340 = vmatmul.msk.bf16.gmra.mxu2 %vm546_vm1, %v2370_v52 }
 0x472   : > { %2342 = vmatmul.msk.bf16.gmra.mxu3 %vm546_vm1, %v2370_v52 }
 0x4b8   : > { %v1723_v14 = vpop.f32.mrf.mxu0 }
 0x4b9   : > { %v1742_v59 = vpop.f32.mrf.mxu1  ;;  %v1724_v49 = vadd.f32 %v1723_v14, %v1669_v36 }
 0x4ba   : > { %v1743_v52 = vadd.f32 %v1742_v59, %v1669_v36 }
 0x4bb   : > { %v1790_v61 = vmax.f32 %v1724_v49, 0.0 }
 0x4bc   : > { %v1791_v62 = vmax.f32 %v1743_v52, 0.0 }
 0x4c0   : > { %v1725_v20 = vpop.f32.mrf.mxu0 }
 0x4c1   : > { %v1744_v45 = vpop.f32.mrf.mxu1  ;;  %v1726_v41 = vadd.f32 %v1725_v20, %v1674_v26 }
 0x4c2   : > { %v1745_v46 = vadd.f32 %v1744_v45, %v1674_v26 }
 0x4c3   : > { %v1794_v55 = vmax.f32 %v1726_v41, 0.0  ;;  %v3040_v41 = vpop.permute.xlu1 %1884 }
 0x4c4   : > { %v1795_v58 = vmax.f32 %v1745_v46, 0.0 }
 0x4c5   : > { %v1806_v63 = vpack.c.bf16 %v1794_v55, %v1790_v61 }
 0x4c6   : > { %v1807_v0 = vpack.c.bf16 %v1795_v58, %v1791_v62 }
 0x4c8   : > { %v1728_v32 = vpop.f32.mrf.mxu0 }
 0x4c9   : > { %v1747_v24 = vpop.f32.mrf.mxu1  ;;  %v1729_v29 = vadd.f32 %v1728_v32, %v1679_v47 }
 0x4ca   : > { %v1748_v33 = vadd.f32 %v1747_v24, %v1679_v47 }
 0x4cb   : > { %v1798_v39 = vmax.f32 %v1729_v29, 0.0 }
 0x4cc   : > { %v1799_v40 = vmax.f32 %v1748_v33, 0.0 }
 0x4d0   : > { %v1730_v38 = vpop.f32.mrf.mxu0 }
 0x4d1   : > { %v1731_v42 = vadd.f32 %v1730_v38, %v1684_v23  ;;  %v1749_v22 = vpop.f32.mrf.mxu1 }
 0x4d2   : > { %v1750_v48 = vadd.f32 %v1749_v22, %v1684_v23 }
 0x4d3   : > { %v1802_v51 = vmax.f32 %v1731_v42, 0.0 }
 0x4d4   : > { %v1803_v53 = vmax.f32 %v1750_v48, 0.0 }
 0x4d5   : > { %v1810_v56 = vpack.c.bf16 %v1802_v51, %v1798_v39 }
 0x4d6   : > { %v1811_v60 = vpack.c.bf16 %v1803_v53, %v1799_v40 }
 0x4d7   : > { %1832 = vmatpush.bf16.msra.mxu0 %v1810_v56 }
 0x4d8   : > { %1845 = vmatpush.bf16.msra.mxu1 %v1811_v60 }
 0x4db   : > { %1833 = vmatpush.bf16.msra.mxu0 %v1806_v63 }
 0x4dc   : > { %1846 = vmatpush.bf16.msra.mxu1 %v1807_v0 }
 0x4de   : > { %2345 = vmatmul.msk.bf16.vlgmr.msra.gmra.mxu0 %vm673_vm2, %v2343_v1 }
 0x4df   : > { %1896 = vmatpush.bf16.msrb.mxu0 %v1810_v56  ;;  %2346 = vmatmul.msk.bf16.vlgmr.msra.gmra.mxu1 %vm673_vm2, %v2343_v1 }
 0x4e0   : > { %1909 = vmatpush.bf16.msrb.mxu1 %v1811_v60 }
 0x4e3   : > { %1897 = vmatpush.bf16.msrb.mxu0 %v1806_v63  ;;  %v1761_v3 = vpop.f32.mrf.mxu2 }
 0x4e4   : > { %1910 = vmatpush.bf16.msrb.mxu1 %v1807_v0  ;;  %v1762_v30 = vadd.f32 %v1761_v3, %v1669_v36 }
 0x4e5   : > { %v1780_v6 = vpop.f32.mrf.mxu3 }
 0x4e6   : > { %v1781_v8 = vadd.f32 %v1780_v6, %v1669_v36  ;;  %v1792_v32 = vmax.f32 %v1762_v30, 0.0 }
 0x4e8   : > { %v1793_v24 = vmax.f32 %v1781_v8, 0.0 }
 0x4eb   : > { %v1763_v7 = vpop.f32.mrf.mxu2 }
 0x4ec   : > { %v1764_v44 = vadd.f32 %v1763_v7, %v1674_v26 }
 0x4ed   : > { %v1782_v12 = vpop.f32.mrf.mxu3 }
 0x4ee   : > { %2351 = vmatmul.msk.bf16.vlgmr.msrb.gmra.mxu0 %vm673_vm2, %v2349_v9  ;;  %v1783_v19 = vadd.f32 %v1782_v12, %v1674_v26  ;;  %v1796_v14 = vmax.f32 %v1764_v44, 0.0 }
 0x4ef   : > { %2352 = vmatmul.msk.bf16.vlgmr.msrb.gmra.mxu1 %vm673_vm2, %v2349_v9 }
 0x4f0   : > { %v1797_v20 = vmax.f32 %v1783_v19, 0.0 }
 0x4f2   : > { %v1809_v29 = vpack.c.bf16 %v1797_v20, %v1793_v24 }
 0x4f3   : > { %v1766_v10 = vpop.f32.mrf.mxu2 }
 0x4f4   : > { %v1767_v43 = vadd.f32 %v1766_v10, %v1679_v47 }
 0x4f5   : > { %v1785_v35 = vpop.f32.mrf.mxu3 }
 0x4f6   : > { %v1786_v37 = vadd.f32 %v1785_v35, %v1679_v47  ;;  %v1800_v17 = vmax.f32 %v1767_v43, 0.0  ;;  %v1808_v47 = vpack.c.bf16 %v1796_v14, %v1792_v32 }
 0x4f8   : > { %v1801_v13 = vmax.f32 %v1786_v37, 0.0 }
 0x4fb   : > { %v1768_v11 = vpop.f32.mrf.mxu2 }
 0x4fc   : > { %v1769_v15 = vadd.f32 %v1768_v11, %v1684_v23 }
 0x4fd   : > { %v1787_v16 = vpop.f32.mrf.mxu3 }
 0x4fe   : > { %v1788_v25 = vadd.f32 %v1787_v16, %v1684_v23  ;;  %v1804_v5 = vmax.f32 %v1769_v15, 0.0 }
 0x500   : > { %v1805_v57 = vmax.f32 %v1788_v25, 0.0  ;;  %v1812_v59 = vpack.c.bf16 %v1804_v5, %v1800_v17  ;;  %v3048_v17 = vpop.permute.xlu2 %1820 }
 0x502   : > { %v1813_v45 = vpack.c.bf16 %v1805_v57, %v1801_v13  ;;  %1858 = vmatpush.bf16.msra.mxu2 %v1812_v59 }
 0x504   : > { %1871 = vmatpush.bf16.msra.mxu3 %v1813_v45 }
 0x506   : > { %1859 = vmatpush.bf16.msra.mxu2 %v1808_v47 }
 0x508   : > { %1872 = vmatpush.bf16.msra.mxu3 %v1809_v29 }
 0x509   : > { %2347 = vmatmul.msk.bf16.vlgmr.msra.gmra.mxu2 %vm673_vm2, %v2343_v1 }
 0x50a   : > { %1922 = vmatpush.bf16.msrb.mxu2 %v1812_v59 }
 0x50b   : > { %2348 = vmatmul.msk.bf16.vlgmr.msra.gmra.mxu3 %vm673_vm2, %v2343_v1 }
 0x50c   : > { %1935 = vmatpush.bf16.msrb.mxu3 %v1813_v45 }
 0x50e   : > { %1923 = vmatpush.bf16.msrb.mxu2 %v1808_v47 }
 0x510   : > { %1936 = vmatpush.bf16.msrb.mxu3 %v1809_v29 }
 0x519   : > { %2353 = vmatmul.msk.bf16.vlgmr.msrb.gmra.mxu2 %vm673_vm2, %v2349_v9 }
 0x51b   : > { %2354 = vmatmul.msk.bf16.vlgmr.msrb.gmra.mxu3 %vm673_vm2, %v2349_v9 }
 0x55b   : > { %v1835_v23 = vpop.f32.mrf.mxu0 }
 0x55c   : > { %v1848_v26 = vpop.f32.mrf.mxu1  ;;  %v1836_v45 = vadd.f32 %v1835_v23, %v3048_v17 }
 0x55d   : > { %v1849_v57 = vadd.f32 %v1848_v26, %v3048_v17 }
 0x563   : > { %v1837_v33 = vpop.f32.mrf.mxu0 }
 0x564   : > { %v1850_v38 = vpop.f32.mrf.mxu1 }
 0x56b   : > { %v1899_v42 = vpop.f32.mrf.mxu0 }
 0x56c   : > { %v1900_v22 = vadd.f32 %v1899_v42, %v3040_v41  ;;  %v1912_v36 = vpop.f32.mrf.mxu1 }
 0x56d   : > { %v1913_v46 = vadd.f32 %v1912_v36, %v3040_v41 }
 0x56e   : > { %v2355_v48 = vmul.f32 -1.442695, %v1900_v22 }
 0x56f   : > { %v2356_v49 = vmul.f32 -1.442695, %v1913_v46 }
 0x570   : > { %2462 = vpow2.f32 %v2355_v48 }
 0x571   : > { %2464 = vpow2.f32 %v2356_v49 }
 0x573   : > { %v1901_v39 = vpop.f32.mrf.mxu0 }
 0x574   : > { %v1914_v51 = vpop.f32.mrf.mxu1 }
 0x576   : > { %v2463_v52 = vpop.eup %2462 }
 0x577   : > { %v2465_v40 = vpop.eup %2464  ;;  %v1954_v53 = vadd.f32 1.0, %v2463_v52 }
 0x578   : > { %v1955_v55 = vadd.f32 1.0, %v2465_v40 }
 0x579   : > { %2466 = vrcp.f32 %v1954_v53  ;;  %v1969_v63 = vand.u32 2147483648, %v1954_v53  ;;  %v1967_v3 = vand.u32 2147483647, %v1954_v53  ;;  %vm1963_vm15 = vweird.f32 %v1954_v53 }
 0x57a   : > { %2468 = vrcp.f32 %v1955_v55  ;;  %v1984_v6 = vand.u32 2147483648, %v1955_v55  ;;  %v1982_v9 = vand.u32 2147483647, %v1955_v55  ;;  %vm1978_vm4 = vweird.f32 %v1955_v55 }
 0x57b   : > { %v1970_v10 = vor.u32 1.1754944e-38, %v1969_v63  ;;  %vm1968_vm5 = vcmp.eq.f32.partialorder %v1967_v3, 8.507059e+37 }
 0x57c   : > { %v1985_v37 = vor.u32 1.1754944e-38, %v1984_v6  ;;  %vm1983_vm7 = vcmp.eq.f32.partialorder %v1982_v9, 8.507059e+37 }
 0x57f   : > { %v2467_v56 = vpop.eup %2466 }
 0x580   : > { %v2469_v58 = vpop.eup %2468  ;;  %v1959_v60 = vmul.f32 %v2467_v56, %v1954_v53  ;;  %vm1964_vm1 = vweird.f32 %v2467_v56 }
 0x581   : > { %v1974_v61 = vmul.f32 %v2469_v58, %v1955_v55  ;;  %vm1979_vm2 = vweird.f32 %v2469_v58  ;;  %vm1965_vm3 = vmor %vm1963_vm15, %vm1964_vm1 }
 0x582   : > { %v1960_v62 = vsub.f32 1.0, %v1959_v60  ;;  %vm1980_vm6 = vmor %vm1978_vm4, %vm1979_vm2  ;;  %vm2102_vm4 = vcmp.lt.s32.totalorder %v484_v50, 512 }
 0x583   : > { %v1975_v0 = vsub.f32 1.0, %v1974_v61 }
 0x584   : > { %v1961_v1 = vmul.f32 %v2467_v56, %v1960_v62 }
 0x585   : > { %v1976_v7 = vmul.f32 %v2469_v58, %v1975_v0 }
 0x586   : > { %v1962_v12 = vadd.f32 %v2467_v56, %v1961_v1 }
 0x587   : > { %v1977_v35 = vadd.f32 %v2469_v58, %v1976_v7 }
 0x588   : > { %v1966_v43 = vsel %vm1965_vm3, %v2467_v56, %v1962_v12 }
 0x589   : > { %v1971_v11 = vsel %vm1968_vm5, %v1970_v10, %v1966_v43  ;;  %v1981_v44 = vsel %vm1980_vm6, %v2469_v58, %v1977_v35 }
 0x58a   : > { %v2018_v15 = vadd.f32 0.001, %v1971_v11  ;;  %v1986_v16 = vsel %vm1983_vm7, %v1985_v37, %v1981_v44 }
 0x58b   : > { %v2019_v19 = vadd.f32 0.001, %v1986_v16 }
 0x58c   : > { %v2022_v25 = vsel %vm486_vm9, 1.0, %v2018_v15  ;;  %v3046_v30 = vpop.f32.mrf.mxu2 }
 0x58d   : > { %v2023_v5 = vsel %vm486_vm9, 1.0, %v2019_v19  ;;  %v2034_v13 = vmul.f32 %v2022_v25, %v2964_v31  ;;  %v2026_v14 = vmul.f32 %v2022_v25, %v2970_v28 }
 0x58e   : > { %v3052_v8 = vpop.f32.mrf.mxu3  ;;  %v2027_v59 = vmul.f32 %v2023_v5, %v2972_v18  ;;  %v2035_v20 = vmul.f32 %v2023_v5, %v2968_v34 }
 0x58f   : > { %2470 = vlog2.f32 %v2034_v13  ;;  %v2030_v24 = vadd.f32 %v2026_v14, %v1836_v45 }
 0x590   : > { %v2031_v32 = vadd.f32 %v2027_v59, %v1849_v57  ;;  %2472 = vlog2.f32 %v2035_v20 }
 0x592   : > { %v2042_v47 = vrot.slane %v2031_v32, 4 }
 0x594   : > { %v1863_v31 = vpop.f32.mrf.mxu2  ;;  %v2045_v28 = vsel %vm2044_vm8, %v2030_v24, %v2042_v47 }
 0x595   : > { %v2471_v18 = vpop.eup %2470  ;;  %2049 = vst [vmem:[%s3065_s25] sm:$0xff] %v2045_v28 }
 0x596   : > { %v1876_v34 = vpop.f32.mrf.mxu3  ;;  %v2473_v29 = vpop.eup %2472  ;;  %v2052_v23 = vmul.f32 0.6931472, %v2471_v18 }
 0x597   : > { %v2054_v26 = vmul.f32 0.6931472, %v2473_v29 }
 0x598   : > { %v2059_v33 = vsel %vm2044_vm8, %v2052_v23, 0.0  ;;  %v1875_v23 = vadd.f32 %v3052_v8, %v3048_v17 }
 0x599   : > { %v2060_v38 = vrot.slane %v2059_v33, 4  ;;  %v2066_v42 = vsel %vm2044_vm8, %v2054_v26, 0.0 }
 0x59a   : > { %v2067_v22 = vrot.slane %v2066_v42, 4 }
 0x59b   : > { %v2061_v36 = vadd.f32 %v2060_v38, %v2059_v33 }
 0x59c   : > { %v1925_v46 = vpop.f32.mrf.mxu2  ;;  %v2068_v48 = vadd.f32 %v2067_v22, %v2066_v42  ;;  %v1862_v42 = vadd.f32 %v3046_v30, %v3048_v17 }
 0x59d   : > { %v1926_v49 = vadd.f32 %v1925_v46, %v3040_v41  ;;  %v2062_v51 = vrot.slane %v2061_v36, 2 }
 0x59e   : > { %v1938_v39 = vpop.f32.mrf.mxu3  ;;  %v2069_v40 = vrot.slane %v2068_v48, 2 }
 0x59f   : > { %v1939_v52 = vadd.f32 %v1938_v39, %v3040_v41  ;;  %v2357_v53 = vmul.f32 -1.442695, %v1926_v49  ;;  %v2063_v55 = vadd.f32 %v2062_v51, %v2061_v36 }
 0x5a0   : > { %v2070_v58 = vadd.f32 %v2069_v40, %v2068_v48 }
 0x5a1   : > { %v2358_v56 = vmul.f32 -1.442695, %v1939_v52  ;;  %2474 = vpow2.f32 %v2357_v53  ;;  %v2064_v60 = vrot.slane %v2063_v55, 1 }
 0x5a2   : > { %v2071_v61 = vrot.slane %v2070_v58, 1 }
 0x5a3   : > { %2476 = vpow2.f32 %v2358_v56  ;;  %v2065_v1 = vadd.f32 %v2064_v60, %v2063_v55 }
 0x5a4   : > { %v1927_v62 = vpop.f32.mrf.mxu2  ;;  %v2072_v63 = vadd.f32 %v2071_v61, %v2070_v58 }
 0x5a6   : > { %v1940_v0 = vpop.f32.mrf.mxu3  ;;  %v2091_v3 = vrot.slane %v2072_v63, 7 }
 0x5a7   : > { %v2475_v6 = vpop.eup %2474 }
 0x5a8   : > { %v1956_v9 = vadd.f32 1.0, %v2475_v6  ;;  %v3073_v12 = vsel %vm2094_vm10, %v2065_v1, %v2091_v3 }
 0x5a9   : > { %v2477_v7 = vpop.eup %2476 }
 0x5aa   : > { %v1957_v41 = vadd.f32 1.0, %v2477_v7  ;;  %2478 = vrcp.f32 %v1956_v9  ;;  %v1999_v44 = vand.u32 2147483648, %v1956_v9  ;;  %v1997_v19 = vand.u32 2147483647, %v1956_v9 }
 0x5ab   : > { %vm1993_vm13 = vweird.f32 %v1956_v9 }
 0x5ac   : > { %2480 = vrcp.f32 %v1957_v41  ;;  %v2014_v25 = vand.u32 2147483648, %v1957_v41  ;;  %v2012_v13 = vand.u32 2147483647, %v1957_v41  ;;  %v2000_v14 = vor.u32 1.1754944e-38, %v1999_v44 }
 0x5ad   : > { %vm2008_vm1 = vweird.f32 %v1957_v41  ;;  %vm1998_vm2 = vcmp.eq.f32.partialorder %v1997_v19, 8.507059e+37 }
 0x5ae   : > { %v2015_v45 = vor.u32 1.1754944e-38, %v2014_v25  ;;  %vm2013_vm3 = vcmp.eq.f32.partialorder %v2012_v13, 8.507059e+37 }
 0x5b0   : > { %v2479_v10 = vpop.eup %2478 }
 0x5b1   : > { %v1989_v43 = vmul.f32 %v2479_v10, %v1956_v9  ;;  %vm1994_vm11 = vweird.f32 %v2479_v10 }
 0x5b2   : > { %v2481_v35 = vpop.eup %2480  ;;  %vm1995_vm14 = vmor %vm1993_vm13, %vm1994_vm11 }
 0x5b3   : > { %v2004_v37 = vmul.f32 %v2481_v35, %v1957_v41  ;;  %v1990_v11 = vsub.f32 1.0, %v1989_v43  ;;  %vm2009_vm12 = vweird.f32 %v2481_v35 }
 0x5b4   : > { %vm2010_vm15 = vmor %vm2008_vm1, %vm2009_vm12 }
 0x5b5   : > { %v2005_v15 = vsub.f32 1.0, %v2004_v37  ;;  %v1991_v16 = vmul.f32 %v2479_v10, %v1990_v11 }
 0x5b7   : > { %v2006_v5 = vmul.f32 %v2481_v35, %v2005_v15  ;;  %v1992_v57 = vadd.f32 %v2479_v10, %v1991_v16 }
 0x5b9   : > { %v2007_v59 = vadd.f32 %v2481_v35, %v2006_v5  ;;  %v1996_v20 = vsel %vm1995_vm14, %v2479_v10, %v1992_v57 }
 0x5ba   : > { %v2001_v32 = vsel %vm1998_vm2, %v2000_v14, %v1996_v20 }
 0x5bb   : > { %v2011_v24 = vsel %vm2010_vm15, %v2481_v35, %v2007_v59  ;;  %v2020_v47 = vadd.f32 0.001, %v2001_v32 }
 0x5bc   : > { %v2016_v31 = vsel %vm2013_vm3, %v2015_v45, %v2011_v24 }
 0x5bd   : > { %v2021_v28 = vadd.f32 0.001, %v2016_v31  ;;  %v2024_v18 = vsel %vm486_vm9, 1.0, %v2020_v47 }
 0x5be   : > { %v2036_v34 = vmul.f32 %v2024_v18, %v3003_v27  ;;  %v2028_v26 = vmul.f32 %v2024_v18, %v3010_v2 }
 0x5bf   : > { %v2025_v29 = vsel %vm486_vm9, 1.0, %v2021_v28  ;;  %vm2096_vm9 = vcmask 1042434  }
 0x5c0   : > { %v2029_v33 = vmul.f32 %v2025_v29, %v3012_v4  ;;  %v2037_v38 = vmul.f32 %v2025_v29, %v3008_v21  ;;  %2482 = vlog2.f32 %v2036_v34  ;;  %v2032_v27 = vadd.f32 %v2028_v26, %v1862_v42 }
 0x5c2   : > { %v2033_v22 = vadd.f32 %v2029_v33, %v1875_v23  ;;  %2484 = vlog2.f32 %v2037_v38 }
 0x5c4   : > { %v2043_v36 = vrot.slane %v2033_v22, 4 }
 0x5c6   : > { %v2046_v54 = vsel %vm2044_vm8, %v2032_v27, %v2043_v36  ;;  %v2483_v46 = vpop.eup %2482 }
 0x5c7   : > { %2050 = vst [vmem:[%s3065_s25 + $0x8] sm:$0xff] %v2046_v54  ;;  %v2056_v48 = vmul.f32 0.6931472, %v2483_v46 }
 0x5c8   : > { %v2485_v8 = vpop.eup %2484 }
 0x5c9   : > { %v2058_v2 = vmul.f32 0.6931472, %v2485_v8  ;;  %v2073_v4 = vsel %vm2044_vm8, %v2056_v48, 0.0 }
 0x5ca   : > { %v2074_v21 = vrot.slane %v2073_v4, 4 }
 0x5cb   : > { %v2080_v49 = vsel %vm2044_vm8, %v2058_v2, 0.0 }
 0x5cc   : > { %v2081_v39 = vrot.slane %v2080_v49, 4  ;;  %v2075_v30 = vadd.f32 %v2074_v21, %v2073_v4 }
 0x5ce   : > { %v2082_v17 = vadd.f32 %v2081_v39, %v2080_v49  ;;  %v2076_v51 = vrot.slane %v2075_v30, 2 }
 0x5d0   : > { %v2083_v52 = vrot.slane %v2082_v17, 2  ;;  %v2077_v40 = vadd.f32 %v2076_v51, %v2075_v30 }
 0x5d2   : > { %v2084_v53 = vadd.f32 %v2083_v52, %v2082_v17  ;;  %v2078_v55 = vrot.slane %v2077_v40, 1 }
 0x5d4   : > { %v2085_v56 = vrot.slane %v2084_v53, 1  ;;  %v2079_v58 = vadd.f32 %v2078_v55, %v2077_v40 }
 0x5d6   : > { %v2086_v60 = vadd.f32 %v2085_v56, %v2084_v53  ;;  %v2092_v61 = vrot.slane %v2079_v58, 6 }
 0x5d8   : > { %v2093_v62 = vrot.slane %v2086_v60, 5 }
 0x5da   : > { %v2097_v63 = vsel %vm2096_vm9, %v2092_v61, %v2093_v62 }
 0x5db   : > { %v2098_v0 = vsel %vm553_vm0, %v3073_v12, %v2097_v63 }
 0x5dc   : > { %2104 = vst.msk [vmem:[%s469_s22] sm:$0xf] %vm2102_vm4, %v2098_v0 }
 0x5dd   : > { %2513 = shalt.err (!%p2510_p3)
}
 0x5de   : > { %2371 = dma.vmem_to_hbm [thread:$0]  (%p2661_p5), %s2128_s24, 64, %s2130_s17, %s2111_s27  }
 0x5df PF: > { %p2377_p4 = scmp.ge.s32.totalorder %s2548_s16, 2  ;;  %s2149_s22 = sand.u32 1, %s2536_s29  }
 0x5e0   : > { %s2150_s25 = scalar_lea.sflag [#allocation3], %s2149_s22 }
 0x5e1   : > { %p2374_p7 = pnand %p2377_p4, %p2665_p6 }
 0x5e3   : > { %p2375_p8 = pneg %p2374_p7 }
 0x5e5   : > { %2531 = dma.done.wait (%p2375_p8), %s2150_s25, 64  }
 0x5e6   : > { %2533 = vsyncadd (%p2375_p8), %s2150_s25, 4294967232  ;;  %s3152_s16 = sld [smem:[#allocation6_spill]]  ;;  %s3155_s29 = smov %s2540_s30 }
 0x5e7   : > { %s3153_s18 = sld [smem:[#allocation5_spill]] }
 0x5e8   : > { %s3154_s15 = sld [smem:[#allocation7_spill]] }
 0x5ec   : > { %p25_p9 = scmp.ge.s32.totalorder %s3152_s16, 4  }
 0x5ed   : > { %s3156_s30 = smov %s3153_s18 }
 0x5ee   :  { %27 = sbr.rel (!%p25_p9) target bundleno = 3 (0x3), region = 133 }
 0x5f3   :  { %2156 = vsyncpa [#allocation3], 1 }
 0x5f4   :  { %2158 = vsyncpa [#allocation3 + $0x1], 1 }

</bundles_post_ra>
